<compile_context>
chip_gen: v7x
topology: tpu7x:2x2x1
jax: 0.10.0
libtpu: 0.0.40
codegen_flags: <defaults>
</compile_context>

<pallas_src>
import jax
import jax.numpy as jnp
from jax.experimental import pallas as pl
from jax.experimental.pallas import tpu as pltpu

HIDDEN = 768            # BERT hidden size (fixed by fc = Linear(768, 11))
NUM_CLASSES = 11
PAD_CLASSES = 128       # lane-dense padded class dimension
NEG_INF = -1e30         # baked into the padded bias columns (softmax mask)
MAX_ROWS_PER_BLOCK = 256  # batch-grid tile once B grows (v6e/v7x; use 128 on v5e)


def _head_kernel(cls_ref, wp_ref, bp_ref, wf_ref, bf_ref, out_ref):
    """Fused pooler (dense+tanh) -> classifier (dense) -> softmax(dim=1).

    cls_ref : (B, 768)   bf16   CLS hidden state
    wp_ref  : (768, 768) bf16   pooler weight (in, out)
    bp_ref  : (1, 768)   f32    pooler bias
    wf_ref  : (768, 128) bf16   classifier weight, zero-padded past NUM_CLASSES
    bf_ref  : (1, 128)   f32    classifier bias, -1e30 past NUM_CLASSES
    out_ref : (B, 128)   f32    softmax probabilities (padded cols -> 0)
    """
    # BERT pooler: tanh(cls @ Wp + bp). bf16 MXU matmul, f32 accumulation;
    # tanh kept in f32 for cross-generation (v5e) EUP compatibility.
    pooled = jnp.tanh(
        jnp.dot(cls_ref[...], wp_ref[...], preferred_element_type=jnp.float32)
        + bp_ref[...]
    )                                                            # (B, 768) f32

    # Classifier fc in a lane-dense (B, 128) slab.  Padded wf columns are 0 and
    # padded bias columns are -1e30, so padded logits are already masked.
    logits = (
        jnp.dot(pooled.astype(jnp.bfloat16), wf_ref[...],
                preferred_element_type=jnp.float32)
        + bf_ref[...]
    )                                                            # (B, 128) f32

    # Numerically stable softmax; exact reciprocal on the EUP slot (approx=True
    # made row sums off by ~1e-3 and failed validation).
    m = jnp.max(logits, axis=1, keepdims=True)
    e = jnp.exp(logits - m)
    denom = jnp.sum(e, axis=1, keepdims=True)
    out_ref[...] = e * pl.reciprocal(denom, approx=False)


def _cost_estimate(rows):
    flops = 2 * rows * HIDDEN * (HIDDEN + PAD_CLASSES)
    transcendentals = rows * (HIDDEN + PAD_CLASSES + 1)   # tanh + exp + recip
    bytes_accessed = (
        HIDDEN * HIDDEN * 2 + HIDDEN * PAD_CLASSES * 2    # bf16 weights
        + (HIDDEN + PAD_CLASSES) * 4                      # f32 biases
        + rows * HIDDEN * 2                               # bf16 activations in
        + rows * PAD_CLASSES * 4                          # f32 probs out
    )
    return pl.CostEstimate(flops=flops, transcendentals=transcendentals,
                           bytes_accessed=bytes_accessed)


def pooler_classifier_head(cls_bf16, wp_bf16, bp_f32, wf_pad_bf16, bf_pad_f32):
    """cls_bf16: (B, 768) bf16 -> (B, 11) f32 softmax probabilities."""
    B = cls_bf16.shape[0]

    if B <= MAX_ROWS_PER_BLOCK:
        # Whole arrays resident in VMEM (resident footprint ~1.6 MiB); no grid
        # needed at this batch size.
        vmem = pl.BlockSpec(memory_space=pltpu.MemorySpace.VMEM)
        out_padded = pl.pallas_call(
            _head_kernel,
            out_shape=jax.ShapeDtypeStruct((B, PAD_CLASSES), jnp.float32),
            in_specs=[vmem, vmem, vmem, vmem, vmem],
            out_specs=vmem,
            compiler_params=pltpu.CompilerParams(vmem_limit_bytes=8 << 20),
            cost_estimate=_cost_estimate(B),
        )(cls_bf16, wp_bf16, bp_f32, wf_pad_bf16, bf_pad_f32)
        return out_padded[:, :NUM_CLASSES]

    # Large-batch path: 1-D "parallel" batch grid.  Weights/biases stay at
    # constant block index (resident in VMEM across the grid, and the parallel
    # axis shards across v7x's two TensorCores); activation/output tiles are
    # double-buffered by BlockSpec.  Per-block VMEM ~2.3 MiB << limit.
    bm = MAX_ROWS_PER_BLOCK
    b_pad = pl.cdiv(B, bm) * bm
    if b_pad != B:
        cls_bf16 = jnp.pad(cls_bf16, ((0, b_pad - B), (0, 0)))
    out_padded = pl.pallas_call(
        _head_kernel,
        out_shape=jax.ShapeDtypeStruct((b_pad, PAD_CLASSES), jnp.float32),
        grid=(b_pad // bm,),
        in_specs=[
            pl.BlockSpec((bm, HIDDEN), lambda i: (i, 0)),
            pl.BlockSpec((HIDDEN, HIDDEN), lambda i: (0, 0)),
            pl.BlockSpec((1, HIDDEN), lambda i: (0, 0)),
            pl.BlockSpec((HIDDEN, PAD_CLASSES), lambda i: (0, 0)),
            pl.BlockSpec((1, PAD_CLASSES), lambda i: (0, 0)),
        ],
        out_specs=pl.BlockSpec((bm, PAD_CLASSES), lambda i: (i, 0)),
        compiler_params=pltpu.CompilerParams(
            dimension_semantics=("parallel",), vmem_limit_bytes=16 << 20),
        cost_estimate=_cost_estimate(b_pad),
    )(cls_bf16, wp_bf16, bp_f32, wf_pad_bf16, bf_pad_f32)
    return out_padded[:B, :NUM_CLASSES]


def init_params(key, vocab_size=100, max_seq=32, type_vocab=2):
    ks = jax.random.split(key, 7)
    s = 0.02
    wp = s * jax.random.normal(ks[3], (HIDDEN, HIDDEN), jnp.float32)      # (in, out)
    bp = s * jax.random.normal(ks[4], (1, HIDDEN), jnp.float32)
    wf = s * jax.random.normal(ks[5], (HIDDEN, NUM_CLASSES), jnp.float32)  # (in, out)
    bf = s * jax.random.normal(ks[6], (1, NUM_CLASSES), jnp.float32)

    params = {
        # synthetic "pretrained" embedding tables (stand-in encoder)
        "word_emb": s * jax.random.normal(ks[0], (vocab_size, HIDDEN), jnp.float32),
        "type_emb": s * jax.random.normal(ks[1], (type_vocab, HIDDEN), jnp.float32),
        "pos_emb": s * jax.random.normal(ks[2], (max_seq, HIDDEN), jnp.float32),
        # f32 masters (used by the reference implementation)
        "wp": wp, "bp": bp, "wf": wf, "bf": bf,
    }

    # Kernel-ready weights prepared ONCE here (hoisted out of the per-call
    # path): bf16 matmul operands; classifier padded to a lane-dense 128-wide
    # slab; softmax mask baked into the padded bias columns.
    params["wp_bf16"] = wp.astype(jnp.bfloat16)
    params["bp_f32"] = bp
    params["wf_pad_bf16"] = (
        jnp.zeros((HIDDEN, PAD_CLASSES), jnp.bfloat16)
        .at[:, :NUM_CLASSES].set(wf.astype(jnp.bfloat16))
    )
    params["bf_pad_f32"] = (
        jnp.full((1, PAD_CLASSES), NEG_INF, jnp.float32)
        .at[:, :NUM_CLASSES].set(bf)
    )
    return params


def model_forward(params, input_ids, attention_mask, token_type_ids):
    """Mirrors Model.forward: pretrained(...) -> fc -> softmax(dim=1)."""
    # Synthetic "pretrained" front-end: only the CLS (position-0) token feeds
    # the pooler head, so gather just that row — no (B, S, 768) tensor.
    # TODO(synk): the full pretrained transformer encoder stack (self-attention
    # using attention_mask) is not translated; the CLS-token embedding is fed
    # to the pooler head directly.
    del attention_mask
    cls_hidden = (
        params["word_emb"][input_ids[:, 0]]
        + params["type_emb"][token_type_ids[:, 0]]
        + params["pos_emb"][0][None, :]
    )                                                            # (B, 768) f32
    return pooler_classifier_head(
        cls_hidden.astype(jnp.bfloat16),
        params["wp_bf16"], params["bp_f32"],
        params["wf_pad_bf16"], params["bf_pad_f32"],
    )


def _reference_head(cls_hidden, wp, bp, wf, bf):
    """Pure-JAX f32 reference of the fused head for sanity checking."""
    pooled = jnp.tanh(cls_hidden @ wp + bp)
    logits = pooled @ wf + bf
    return jax.nn.softmax(logits, axis=1)


if __name__ == "__main__":
    key = jax.random.PRNGKey(0)
    k_param, k_ids, k_types = jax.random.split(key, 3)

    B, S, VOCAB = 2, 8, 100
    params = init_params(k_param, vocab_size=VOCAB, max_seq=S)

    input_ids = jax.random.randint(k_ids, (B, S), 0, VOCAB, dtype=jnp.int32)
    attention_mask = jnp.ones((B, S), dtype=jnp.int32)
    token_type_ids = jax.random.randint(k_types, (B, S), 0, 2, dtype=jnp.int32)

    out = model_forward(params, input_ids, attention_mask, token_type_ids)
    out = jax.block_until_ready(out)

    # sanity: shape, softmax rows sum to 1, matches f32 reference of the head
    assert out.shape == (B, NUM_CLASSES)
    assert jnp.allclose(jnp.sum(out, axis=1), 1.0, atol=2e-3)

    cls_hidden = (
        params["word_emb"][input_ids[:, 0]]
        + params["type_emb"][token_type_ids[:, 0]]
        + params["pos_emb"][0][None, :]
    )
    ref = _reference_head(
        cls_hidden, params["wp"], params["bp"], params["wf"], params["bf"]
    )
    assert jnp.allclose(out, ref, atol=5e-2)

    print("KERNEL_OK")
</pallas_src>

<mosaic_0001>
module attributes {stable_mosaic.version = 11 : i64} {
  func.func @_head_kernel(%arg0: memref<2x768xbf16, #tpu.memory_space<vmem>>, %arg1: memref<768x768xbf16, #tpu.memory_space<vmem>>, %arg2: memref<1x768xf32, #tpu.memory_space<vmem>>, %arg3: memref<768x128xbf16, #tpu.memory_space<vmem>>, %arg4: memref<1x128xf32, #tpu.memory_space<vmem>>, %arg5: memref<2x128xf32, #tpu.memory_space<vmem>>) attributes {dimension_semantics = [], scalar_prefetch = 0 : i64, scratch_operands = 0 : i64, tpu.core_type = #tpu.core_type<tc>} {
    %c0 = arith.constant 0 : index
    %c0_0 = arith.constant 0 : index
    %0 = vector.load %arg0[%c0, %c0_0] : memref<2x768xbf16, #tpu.memory_space<vmem>>, vector<2x768xbf16>
    %c0_1 = arith.constant 0 : index
    %c0_2 = arith.constant 0 : index
    %1 = vector.load %arg1[%c0_1, %c0_2] : memref<768x768xbf16, #tpu.memory_space<vmem>>, vector<768x768xbf16>
    %cst = arith.constant dense<0.000000e+00> : vector<2x768xf32>
    %2 = tpu.matmul %0, %1, %cst {dimension_numbers = #tpu.dot_dimension_numbers<[1], [0], [0], [1], [0, 0, 1, 1], [], []>} : vector<2x768xbf16>, vector<768x768xbf16>, vector<2x768xf32> -> vector<2x768xf32>
    %c0_3 = arith.constant 0 : index
    %c0_4 = arith.constant 0 : index
    %3 = vector.load %arg2[%c0_3, %c0_4] : memref<1x768xf32, #tpu.memory_space<vmem>>, vector<1x768xf32>
    %4 = vector.broadcast %3 : vector<1x768xf32> to vector<2x768xf32>
    %5 = arith.addf %2, %4 : vector<2x768xf32>
    %6 = math.tanh %5 : vector<2x768xf32>
    %7 = arith.truncf %6 : vector<2x768xf32> to vector<2x768xbf16>
    %c0_5 = arith.constant 0 : index
    %c0_6 = arith.constant 0 : index
    %8 = vector.load %arg3[%c0_5, %c0_6] : memref<768x128xbf16, #tpu.memory_space<vmem>>, vector<768x128xbf16>
    %cst_7 = arith.constant dense<0.000000e+00> : vector<2x128xf32>
    %9 = tpu.matmul %7, %8, %cst_7 {dimension_numbers = #tpu.dot_dimension_numbers<[1], [0], [0], [1], [0, 0, 1, 1], [], []>} : vector<2x768xbf16>, vector<768x128xbf16>, vector<2x128xf32> -> vector<2x128xf32>
    %c0_8 = arith.constant 0 : index
    %c0_9 = arith.constant 0 : index
    %10 = vector.load %arg4[%c0_8, %c0_9] : memref<1x128xf32, #tpu.memory_space<vmem>>, vector<1x128xf32>
    %11 = vector.broadcast %10 : vector<1x128xf32> to vector<2x128xf32>
    %12 = arith.addf %9, %11 : vector<2x128xf32>
    %cst_10 = arith.constant dense<0xFF800000> : vector<2xf32>
    %13 = vector.multi_reduction <maximumf>, %12, %cst_10 [1] : vector<2x128xf32> to vector<2xf32>
    %14 = vector.shape_cast %13 : vector<2xf32> to vector<2x1xf32>
    %15 = vector.broadcast %14 : vector<2x1xf32> to vector<2x128xf32>
    %16 = arith.subf %12, %15 : vector<2x128xf32>
    %17 = math.exp %16 : vector<2x128xf32>
    %cst_11 = arith.constant dense<0.000000e+00> : vector<2xf32>
    %18 = vector.multi_reduction <add>, %17, %cst_11 [1] : vector<2x128xf32> to vector<2xf32>
    %19 = vector.shape_cast %18 : vector<2xf32> to vector<2x1xf32>
    %20 = tpu.reciprocal %19 : vector<2x1xf32> -> vector<2x1xf32>
    %21 = vector.broadcast %20 : vector<2x1xf32> to vector<2x128xf32>
    %22 = arith.mulf %17, %21 : vector<2x128xf32>
    %c0_12 = arith.constant 0 : index
    %c0_13 = arith.constant 0 : index
    %23 = vector.load %arg5[%c0_12, %c0_13] : memref<2x128xf32, #tpu.memory_space<vmem>>, vector<2x128xf32>
    tpu.vector_store %arg5[%c0_12, %c0_13], %22 {strides = array<i32>} : memref<2x128xf32, #tpu.memory_space<vmem>>, vector<2x128xf32>,
    return
  }
}

</mosaic_0001>

<bundles_post_ra>
// kernel: tpu_custom_call.1
= control target key start
LH: loop header
LB: loop body
LE: loop exit
PB: predicated region body
PF: predicated region fallthrough
CT: control target
= control target key end

     0   :  { %10 = vsyncpa [#allocation3], 0  ;;  %s4072_s0 = inlined_call_operand.hbm [shape: bf16[2,768], index: 0, kind: input, shape index: {}]   ;;  %s4073_s1 = inlined_call_operand.hbm [shape: bf16[768,768], index: 1, kind: input, shape index: {}]   ;;  %s4074_s2 = inlined_call_operand.hbm [shape: f32[1,768], index: 2, kind: input, shape index: {}]   ;;  %s4075_s3 = inlined_call_operand.hbm [shape: bf16[768,128], index: 3, kind: input, shape index: {}]   ;;  %s4076_s4 = inlined_call_operand.hbm [shape: f32[1,128], index: 4, kind: input, shape index: {}]   ;;  %s4077_s5 = inlined_call_operand.hbm [shape: f32[2,128], index: 5, kind: output, shape index: {}]  }
   0x1   :  { %11 = vsyncpa [#allocation6], 0 }
   0x2   :  { %12 = vsyncpa [#allocation9], 0 }
   0x3   :  { %13 = vsyncpa [#allocation4], 0  ;;  %s3900_s18 = smov [#allocation5]   ;;  %s3760_s22 = scalar_lea.hbm %s4073_s1, 36864 }
   0x4   :  { %s29_s19 = sshll.u32 %s3900_s18, 4  ;;  %p3761_p0 = scmp.ne.s32.totalorder %s4073_s1, %s3760_s22  ;;  %s30_s19 = int_to_ptr.vmem [resolvable:$true] %s29_s19 }
   0x5   :  { %p3764_p1 = scmp.lt.u32.totalorder %s3760_s22, %s4073_s1 }
   0x7   :  { %p3766_p2 = pnand %p3764_p1, %p3761_p0 }
   0x9   :  { %3769 = shalt.err (!%p3766_p2)
}
   0xa   :  { %s3770_s27 = scalar_lea.vmem %s30_s19, 36864  ;;  %p3775_p4 = scmp.lt.s32.totalorder %s30_s19, %s30_s19 }
   0xb   :  { %p3771_p3 = scmp.ne.s32.totalorder %s30_s19, %s3770_s27  ;;  %p3776_p5 = scmp.lt.s32.totalorder %s3770_s27, %s3770_s27 }
   0xd   :  { %p3777_p6 = por %p3776_p5, %p3775_p4 }
   0xf   :  { %p3778_p7 = pnand %p3777_p6, %p3771_p3 }
  0x11   :  { %3781 = shalt.err (!%p3778_p7)
}
  0x12   :  { %s3901_s28 = smov 384   ;;  %s3902_s29 = smov 24  }
  0x13   :  { %35 = dma.hbm_to_vmem [thread:$0]  %s4073_s1, 36864, %s30_s19, [#allocation6], %s3901_s28, %s3901_s28, %s3902_s29  }
  0x14   :  { %s3903_s7 = smov [#allocation8]   ;;  %s3782_s11 = scalar_lea.hbm %s4075_s3, 6144 }
  0x15   :  { %s51_s8 = sshll.u32 %s3903_s7, 4  ;;  %p3783_p8 = scmp.ne.s32.totalorder %s4075_s3, %s3782_s11  ;;  %s52_s8 = int_to_ptr.vmem [resolvable:$true] %s51_s8 }
  0x16   :  { %p3786_p9 = scmp.lt.u32.totalorder %s3782_s11, %s4075_s3 }
  0x18   :  { %p3788_p10 = pnand %p3786_p9, %p3783_p8 }
  0x1a   :  { %3791 = shalt.err (!%p3788_p10)
}
  0x1b   :  { %s3792_s16 = scalar_lea.vmem %s52_s8, 6144  ;;  %p3797_p12 = scmp.lt.s32.totalorder %s52_s8, %s52_s8 }
  0x1c   :  { %p3793_p11 = scmp.ne.s32.totalorder %s52_s8, %s3792_s16  ;;  %p3798_p13 = scmp.lt.s32.totalorder %s3792_s16, %s3792_s16 }
  0x1e   :  { %p3799_p0 = por %p3798_p13, %p3797_p12 }
  0x20   :  { %p3800_p1 = pnand %p3799_p0, %p3793_p11 }
  0x22   :  { %3803 = shalt.err (!%p3800_p1)
}
  0x23   :  { %s3904_s1 = smov 64   ;;  %s3905_s17 = smov 4  }
  0x24   :  { %57 = dma.hbm_to_vmem [thread:$0]  %s4075_s3, 6144, %s52_s8, [#allocation9], %s3904_s1, %s3904_s1, %s3905_s17  }
  0x25   :  { %s3906_s20 = smov [#allocation2]   ;;  %s3907_s22 = smov [#allocation7]  }
  0x26   :  { %s20_s21 = sshll.u32 %s3906_s20, 4  ;;  %s42_s23 = sshll.u32 %s3907_s22, 4  ;;  %s21_s21 = int_to_ptr.vmem [resolvable:$true] %s20_s21  ;;  %s43_s23 = int_to_ptr.vmem [resolvable:$true] %s42_s23 }
  0x27   :  { %s3804_s26 = scalar_lea.hbm %s4072_s0, 96 }
  0x28   :  { %p3805_p2 = scmp.ne.s32.totalorder %s4072_s0, %s3804_s26  ;;  %p3808_p3 = scmp.lt.u32.totalorder %s3804_s26, %s4072_s0 }
  0x2a   :  { %p3810_p4 = pnand %p3808_p3, %p3805_p2 }
  0x2c   :  { %3813 = shalt.err (!%p3810_p4)
}
  0x2d   :  { %s3814_s3 = scalar_lea.vmem %s21_s21, 96  ;;  %p3819_p6 = scmp.lt.s32.totalorder %s21_s21, %s21_s21 }
  0x2e   :  { %p3815_p5 = scmp.ne.s32.totalorder %s21_s21, %s3814_s3  ;;  %p3820_p7 = scmp.lt.s32.totalorder %s3814_s3, %s3814_s3 }
  0x30   :  { %p3821_p8 = por %p3820_p7, %p3819_p6 }
  0x32   :  { %p3822_p9 = pnand %p3821_p8, %p3815_p5 }
  0x34   :  { %3825 = shalt.err (!%p3822_p9)
}
  0x35   :  { %23 = dma.hbm_to_vmem [thread:$0]  %s4072_s0, 96, %s21_s21, [#allocation3]  }
  0x36   :  { %s3826_s10 = scalar_lea.hbm %s4074_s2, 96 }
  0x37   :  { %p3827_p10 = scmp.ne.s32.totalorder %s4074_s2, %s3826_s10  ;;  %p3830_p11 = scmp.lt.u32.totalorder %s3826_s10, %s4074_s2 }
  0x39   :  { %p3832_p12 = pnand %p3830_p11, %p3827_p10 }
  0x3b   :  { %3835 = shalt.err (!%p3832_p12)
}
  0x3c   :  { %s3836_s15 = scalar_lea.vmem %s43_s23, 96  ;;  %p3841_p0 = scmp.lt.s32.totalorder %s43_s23, %s43_s23 }
  0x3d   :  { %p3837_p13 = scmp.ne.s32.totalorder %s43_s23, %s3836_s15  ;;  %p3842_p1 = scmp.lt.s32.totalorder %s3836_s15, %s3836_s15 }
  0x3f   :  { %p3843_p2 = por %p3842_p1, %p3841_p0 }
  0x41   :  { %p3844_p3 = pnand %p3843_p2, %p3837_p13 }
  0x43   :  { %3847 = shalt.err (!%p3844_p3)
}
  0x44   :  { %45 = dma.hbm_to_vmem [thread:$0]  %s4074_s2, 96, %s43_s23, [#allocation6]  }
  0x45   :  { %s3908_s1 = smov [#allocation10]   ;;  %s3848_s20 = scalar_lea.hbm %s4076_s4, 16 }
  0x46   :  { %s64_s17 = sshll.u32 %s3908_s1, 4  ;;  %p3849_p4 = scmp.ne.s32.totalorder %s4076_s4, %s3848_s20  ;;  %s65_s17 = int_to_ptr.vmem [resolvable:$true] %s64_s17 }
  0x47   :  { %p3852_p5 = scmp.lt.u32.totalorder %s3848_s20, %s4076_s4 }
  0x49   :  { %p3854_p6 = pnand %p3852_p5, %p3849_p4 }
  0x4b   :  { %3857 = shalt.err (!%p3854_p6)
}
  0x4c   :  { %s3858_s26 = scalar_lea.vmem %s65_s17, 16  ;;  %s3862_s2 = scalar_lea.vmem %s65_s17, 32 }
  0x4d   :  { %p3859_p7 = scmp.ne.s32.totalorder %s65_s17, %s3858_s26  ;;  %p3863_p8 = scmp.lt.s32.totalorder %s65_s17, %s65_s17 }
  0x4e   :  { %p3864_p9 = scmp.lt.s32.totalorder %s3862_s2, %s3858_s26 }
  0x50   :  { %p3865_p10 = por %p3864_p9, %p3863_p8 }
  0x52   :  { %p3866_p11 = pnand %p3865_p10, %p3859_p7 }
  0x54   :  { %3869 = shalt.err (!%p3866_p11)
}
  0x55   :  { %67 = dma.hbm_to_vmem [thread:$0]  %s4076_s4, 16, %s65_s17, [#allocation9]  }
  0x56   :  { %3892 = dma.done.wait [#allocation3], 96  }
  0x57   :  { %3893 = vsyncadd [#allocation3], 4294967200 }
  0x58   :  { %3894 = dma.done.wait [#allocation6], 36960  }
  0x59   :  { %3895 = vsyncadd [#allocation6], 4294930336 }
  0x5a   :  { %3896 = dma.done.wait [#allocation9], 6160  }
  0x5b   :  { %3897 = vsyncadd [#allocation9], 4294961136  ;;  %v3263_v0 = vld [vmem:[#allocation5 + $0x4] ss:$24 sps:$4 sm:$0xff]   ;;  %v3267_v2 = vld [vmem:[#allocation5] ss:$24 sps:$4 sm:$0xff]   ;;  %v375_v36 = vlaneseq }
  0x5c   :  { %v3265_v1 = vld [vmem:[#allocation5 + $0x304] ss:$24 sps:$4 sm:$0xff]   ;;  %1899 = vmatprep.subr.bf16.mxu1 %v3263_v0  ;;  %v3268_v3 = vld [vmem:[#allocation5 + $0x300] ss:$24 sps:$4 sm:$0xff]   ;;  %v3269_v4 = vld [vmem:[#allocation5 + $0x34] ss:$24 sps:$4 sm:$0xff]  }
  0x5d   :  { %1940 = vmatprep.subr.bf16.mxu0 %v3265_v1  ;;  %1900 = vmatpush1.bf16.msra.mxu1 %v3267_v2  ;;  %v3271_v5 = vld [vmem:[#allocation5 + $0x334] ss:$24 sps:$4 sm:$0xff]   ;;  %v3273_v6 = vld [vmem:[#allocation5 + $0x30] ss:$24 sps:$4 sm:$0xff]   ;;  %v3275_v8 = vld [vmem:[#allocation5 + $0x64] ss:$24 sps:$4 sm:$0xff]  }
  0x5e   :  { %1941 = vmatpush1.bf16.msra.mxu0 %v3268_v3  ;;  %1901 = vmatprep.subr.bf16.mxu1 %v3269_v4  ;;  %v3274_v7 = vld [vmem:[#allocation5 + $0x330] ss:$24 sps:$4 sm:$0xff]   ;;  %v3277_v9 = vld [vmem:[#allocation5 + $0x364] ss:$24 sps:$4 sm:$0xff]   ;;  %v3279_v10 = vld [vmem:[#allocation5 + $0x60] ss:$24 sps:$4 sm:$0xff]  }
  0x5f   :  { %1942 = vmatprep.subr.bf16.mxu0 %v3271_v5  ;;  %v3280_v11 = vld [vmem:[#allocation5 + $0x360] ss:$24 sps:$4 sm:$0xff]   ;;  %v3281_v12 = vld [vmem:[#allocation5 + $0x94] ss:$24 sps:$4 sm:$0xff]   ;;  %v3285_v14 = vld [vmem:[#allocation5 + $0x90] ss:$24 sps:$4 sm:$0xff]  }
  0x60   :  { %v3283_v13 = vld [vmem:[#allocation5 + $0x394] ss:$24 sps:$4 sm:$0xff]   ;;  %v3286_v15 = vld [vmem:[#allocation5 + $0x390] ss:$24 sps:$4 sm:$0xff]   ;;  %v3287_v16 = vld [vmem:[#allocation5 + $0xc4] ss:$24 sps:$4 sm:$0xff]  }
  0x61   :  { %1902 = vmatpush1.bf16.msra.mxu1 %v3273_v6  ;;  %v3289_v17 = vld [vmem:[#allocation5 + $0x3c4] ss:$24 sps:$4 sm:$0xff]   ;;  %v3291_v18 = vld [vmem:[#allocation5 + $0xc0] ss:$24 sps:$4 sm:$0xff]   ;;  %v3293_v20 = vld [vmem:[#allocation5 + $0xf4] ss:$24 sps:$4 sm:$0xff]  }
  0x62   :  { %1943 = vmatpush1.bf16.msra.mxu0 %v3274_v7  ;;  %1903 = vmatprep.subr.bf16.mxu1 %v3275_v8  ;;  %v3292_v19 = vld [vmem:[#allocation5 + $0x3c0] ss:$24 sps:$4 sm:$0xff]   ;;  %v3295_v21 = vld [vmem:[#allocation5 + $0x3f4] ss:$24 sps:$4 sm:$0xff]   ;;  %v3297_v22 = vld [vmem:[#allocation5 + $0xf0] ss:$24 sps:$4 sm:$0xff]  }
  0x63   :  { %1944 = vmatprep.subr.bf16.mxu0 %v3277_v9  ;;  %v3298_v23 = vld [vmem:[#allocation5 + $0x3f0] ss:$24 sps:$4 sm:$0xff]   ;;  %v3299_v24 = vld [vmem:[#allocation5 + $0x124] ss:$24 sps:$4 sm:$0xff]   ;;  %v3303_v26 = vld [vmem:[#allocation5 + $0x120] ss:$24 sps:$4 sm:$0xff]  }
  0x64   :  { %v3301_v25 = vld [vmem:[#allocation5 + $0x424] ss:$24 sps:$4 sm:$0xff]   ;;  %v3304_v27 = vld [vmem:[#allocation5 + $0x420] ss:$24 sps:$4 sm:$0xff]   ;;  %v3305_v28 = vld [vmem:[#allocation5 + $0x154] ss:$24 sps:$4 sm:$0xff]  }
  0x65   :  { %1904 = vmatpush1.bf16.msra.mxu1 %v3279_v10  ;;  %v3307_v29 = vld [vmem:[#allocation5 + $0x454] ss:$24 sps:$4 sm:$0xff]   ;;  %v3309_v30 = vld [vmem:[#allocation5 + $0x150] ss:$24 sps:$4 sm:$0xff]   ;;  %v3311_v32 = vld [vmem:[#allocation5 + $0x184] ss:$24 sps:$4 sm:$0xff]  }
  0x66   :  { %1945 = vmatpush1.bf16.msra.mxu0 %v3280_v11  ;;  %1905 = vmatprep.subr.bf16.mxu1 %v3281_v12  ;;  %v3310_v31 = vld [vmem:[#allocation5 + $0x450] ss:$24 sps:$4 sm:$0xff]   ;;  %v3313_v33 = vld [vmem:[#allocation5 + $0x484] ss:$24 sps:$4 sm:$0xff]   ;;  %v3315_v34 = vld [vmem:[#allocation5 + $0x180] ss:$24 sps:$4 sm:$0xff]  }
  0x67   :  { %1946 = vmatprep.subr.bf16.mxu0 %v3283_v13  ;;  %v3316_v35 = vld [vmem:[#allocation5 + $0x480] ss:$24 sps:$4 sm:$0xff]   ;;  %v3909_v37 = vmov 1966171168   ;;  %v3317_v39 = vld [vmem:[#allocation5 + $0x1b4] ss:$24 sps:$4 sm:$0xff]  }
  0x68   :  { %v408_v38 = vunpack.c.l.s4 %v3909_v37  ;;  %v3319_v40 = vld [vmem:[#allocation5 + $0x4b4] ss:$24 sps:$4 sm:$0xff]   ;;  %v3321_v41 = vld [vmem:[#allocation5 + $0x1b0] ss:$24 sps:$4 sm:$0xff]   ;;  %v4001_v42 = vshrl.u32 %v375_v36, 7  ;;  %vm2791_vm0 = vcmask 1041408  }
  0x69   :  { %1906 = vmatpush1.bf16.msra.mxu1 %v3285_v14  ;;  %v3322_v44 = vld [vmem:[#allocation5 + $0x4b0] ss:$24 sps:$4 sm:$0xff]   ;;  %v3323_v45 = vld [vmem:[#allocation5 + $0x1e4] ss:$24 sps:$4 sm:$0xff]   ;;  %v3327_v47 = vld [vmem:[#allocation5 + $0x1e0] ss:$24 sps:$4 sm:$0xff]  }
  0x6a   :  { %1947 = vmatpush1.bf16.msra.mxu0 %v3286_v15  ;;  %1907 = vmatprep.subr.bf16.mxu1 %v3287_v16  ;;  %v409_v43 = vunpack.c.0.s8 %v408_v38  ;;  %v3325_v46 = vld [vmem:[#allocation5 + $0x4e4] ss:$24 sps:$4 sm:$0xff]   ;;  %v3328_v48 = vld [vmem:[#allocation5 + $0x4e0] ss:$24 sps:$4 sm:$0xff]   ;;  %v3329_v50 = vld [vmem:[#allocation5 + $0x214] ss:$24 sps:$4 sm:$0xff]  }
  0x6b   :  { %1948 = vmatprep.subr.bf16.mxu0 %v3289_v17  ;;  %v3331_v51 = vld [vmem:[#allocation5 + $0x514] ss:$24 sps:$4 sm:$0xff]   ;;  %v84_v52 = vld [vmem:[#allocation2] sm:$0x3f]  ;;  %v3333_v53 = vld [vmem:[#allocation5 + $0x210] ss:$24 sps:$4 sm:$0xff]  }
  0x6c   :  { %v4004_v49 = vsub.s32 %v409_v43, %v4001_v42  ;;  %v406_v55 = vcombine.high %v84_v52, %v84_v52  ;;  %v3334_v56 = vld [vmem:[#allocation5 + $0x510] ss:$24 sps:$4 sm:$0xff]   ;;  %v3335_v57 = vld [vmem:[#allocation5 + $0x244] ss:$24 sps:$4 sm:$0xff]   ;;  %v3339_v61 = vld [vmem:[#allocation5 + $0x240] ss:$24 sps:$4 sm:$0xff]  }
  0x6d   :  { %1908 = vmatpush1.bf16.msra.mxu1 %v3291_v18  ;;  %v3337_v58 = vld [vmem:[#allocation5 + $0x544] ss:$24 sps:$4 sm:$0xff]   ;;  %v3340_v0 = vld [vmem:[#allocation5 + $0x540] ss:$24 sps:$4 sm:$0xff]   ;;  %v3341_v1 = vld [vmem:[#allocation5 + $0x274] ss:$24 sps:$4 sm:$0xff]  }
  0x6e   :  { %1949 = vmatpush1.bf16.msra.mxu0 %v3292_v19  ;;  %1909 = vmatprep.subr.bf16.mxu1 %v3293_v20  ;;  %v413_v54 = vrot.slane %v84_v52, %v4004_v49  ;;  %v420_v60 = vrot.slane %v406_v55, %v4004_v49  ;;  %v3343_v2 = vld [vmem:[#allocation5 + $0x574] ss:$24 sps:$4 sm:$0xff]   ;;  %v3345_v4 = vld [vmem:[#allocation5 + $0x270] ss:$24 sps:$4 sm:$0xff]   ;;  %v3347_v6 = vld [vmem:[#allocation5 + $0x2a4] ss:$24 sps:$4 sm:$0xff]  }
  0x6f   :  { %1950 = vmatprep.subr.bf16.mxu0 %v3295_v21  ;;  %v3346_v5 = vld [vmem:[#allocation5 + $0x570] ss:$24 sps:$4 sm:$0xff]   ;;  %v3349_v7 = vld [vmem:[#allocation5 + $0x5a4] ss:$24 sps:$4 sm:$0xff]   ;;  %v3351_v8 = vld [vmem:[#allocation5 + $0x2a0] ss:$24 sps:$4 sm:$0xff]  }
  0x70   :  { %v421_v59 = vcombine.high %v413_v54, %v413_v54  ;;  %v4012_v63 = vrot.slane %v420_v60, %v4004_v49  ;;  %v3352_v9 = vld [vmem:[#allocation5 + $0x5a0] ss:$24 sps:$4 sm:$0xff]   ;;  %v3353_v10 = vld [vmem:[#allocation5 + $0x2d4] ss:$24 sps:$4 sm:$0xff]   ;;  %v3357_v12 = vld [vmem:[#allocation5 + $0x2d0] ss:$24 sps:$4 sm:$0xff]   ;;  %v4021_v13 = vrot.slane %v413_v54, %v4004_v49  ;;  %v422_v17 = vcombine.high %v420_v60, %v420_v60 }
  0x71   :  { %1910 = vmatpush1.bf16.msra.mxu1 %v3297_v22  ;;  %v3355_v11 = vld [vmem:[#allocation5 + $0x5d4] ss:$24 sps:$4 sm:$0xff]   ;;  %v3358_v14 = vld [vmem:[#allocation5 + $0x5d0] ss:$24 sps:$4 sm:$0xff]   ;;  %v3361_v15 = vld [vmem:[#allocation5 + $0x604] ss:$24 sps:$4 sm:$0xff]  }
  0x72   :  { %1951 = vmatpush1.bf16.msra.mxu0 %v3298_v23  ;;  %1911 = vmatprep.subr.bf16.mxu1 %v3299_v24  ;;  %v4009_v62 = vrot.slane %v421_v59, %v4004_v49  ;;  %v3364_v16 = vld [vmem:[#allocation5 + $0xc] ss:$24 sps:$4 sm:$0xff]   ;;  %v3359_v18 = vld [vmem:[#allocation5 + $0x600] ss:$24 sps:$4 sm:$0xff]   ;;  %v4025_v19 = vcombine.high %v4021_v13, %v4021_v13  ;;  %v3370_v22 = vld [vmem:[#allocation5 + $0x3c] ss:$24 sps:$4 sm:$0xff]   ;;  %v4028_v23 = vrot.slane %v422_v17, %v4004_v49 }
  0x73   :  { %1952 = vmatprep.subr.bf16.mxu0 %v3301_v25  ;;  %v3362_v20 = vld [vmem:[#allocation5 + $0x8] ss:$24 sps:$4 sm:$0xff]   ;;  %v3367_v21 = vld [vmem:[#allocation5 + $0x634] ss:$24 sps:$4 sm:$0xff]   ;;  %v3368_v25 = vld [vmem:[#allocation5 + $0x38] ss:$24 sps:$4 sm:$0xff]  }
  0x74   :  { %v4016_v3 = vcombine.high %v4009_v62, %v4009_v62  ;;  %1931 = vmatprep.mubr.bf16.mxu1 %v4009_v62  ;;  %v3365_v24 = vld [vmem:[#allocation5 + $0x630] ss:$24 sps:$4 sm:$0xff]   ;;  %v3383_v36 = vld [vmem:[#allocation5 + $0x6c0] ss:$24 sps:$4 sm:$0xff]   ;;  %v3391_v38 = vld [vmem:[#allocation5 + $0x6f4] ss:$24 sps:$4 sm:$0xff]  }
  0x75   :  { %1912 = vmatpush1.bf16.msra.mxu1 %v3303_v26  ;;  %v3373_v26 = vld [vmem:[#allocation5 + $0x664] ss:$24 sps:$4 sm:$0xff]   ;;  %v3386_v37 = vld [vmem:[#allocation5 + $0xc8] ss:$24 sps:$4 sm:$0xff]   ;;  %v3415_v55 = vld [vmem:[#allocation5 + $0x7b4] ss:$24 sps:$4 sm:$0xff]  }
  0x76   :  { %1953 = vmatpush1.bf16.msra.mxu0 %v3304_v27  ;;  %1913 = vmatprep.subr.bf16.mxu1 %v3305_v28  ;;  %v3376_v27 = vld [vmem:[#allocation5 + $0x6c] ss:$24 sps:$4 sm:$0xff]   ;;  %v3371_v28 = vld [vmem:[#allocation5 + $0x660] ss:$24 sps:$4 sm:$0xff]   ;;  %v3401_v49 = vld [vmem:[#allocation5 + $0x750] ss:$24 sps:$4 sm:$0xff]  }
  0x77   :  { %1954 = vmatprep.subr.bf16.mxu0 %v3307_v29  ;;  %1972 = vmatprep.mubr.bf16.mxu0 %v4016_v3  ;;  %v3374_v29 = vld [vmem:[#allocation5 + $0x68] ss:$24 sps:$4 sm:$0xff]   ;;  %v3397_v43 = vld [vmem:[#allocation5 + $0x724] ss:$24 sps:$4 sm:$0xff]   ;;  %s3910_s4 = smov [#allocation11]  }
  0x78   :  { %v3412_v52 = vld [vmem:[#allocation5 + $0x18c] ss:$24 sps:$4 sm:$0xff]   ;;  %v3410_v54 = vld [vmem:[#allocation5 + $0x188] ss:$24 sps:$4 sm:$0xff]   ;;  %s2810_s28 = sshll.u32 %s3910_s4, 4  ;;  %s2811_s28 = int_to_ptr.vmem [resolvable:$true] %s2810_s28 }
  0x79   :  { %1914 = vmatpush1.bf16.msra.mxu1 %v3309_v30  ;;  %v3379_v30 = vld [vmem:[#allocation5 + $0x694] ss:$24 sps:$4 sm:$0xff]   ;;  %v3421_v59 = vld [vmem:[#allocation5 + $0x7e4] ss:$24 sps:$4 sm:$0xff]   ;;  %v3443_v17 = vld [vmem:[#allocation5 + $0x8a0] ss:$24 sps:$4 sm:$0xff]   ;;  %p3875_p13 = scmp.lt.s32.totalorder %s2811_s28, %s2811_s28 }
  0x7a   :  { %1955 = vmatpush1.bf16.msra.mxu0 %v3310_v31  ;;  %1915 = vmatprep.subr.bf16.mxu1 %v3311_v32  ;;  %v3382_v31 = vld [vmem:[#allocation5 + $0x9c] ss:$24 sps:$4 sm:$0xff]   ;;  %v3377_v32 = vld [vmem:[#allocation5 + $0x690] ss:$24 sps:$4 sm:$0xff]   ;;  %v3424_v60 = vld [vmem:[#allocation5 + $0x1ec] ss:$24 sps:$4 sm:$0xff]  }
  0x7b   :  { %1956 = vmatprep.subr.bf16.mxu0 %v3313_v33  ;;  %v3380_v33 = vld [vmem:[#allocation5 + $0x98] ss:$24 sps:$4 sm:$0xff]   ;;  %s3870_s29 = scalar_lea.vmem %s2811_s28, 32 }
  0x7c   :  { %p3871_p12 = scmp.ne.s32.totalorder %s2811_s28, %s3870_s29  ;;  %p3876_p0 = scmp.lt.s32.totalorder %s3870_s29, %s3870_s29 }
  0x7d   :  { %1916 = vmatpush1.bf16.msra.mxu1 %v3315_v34  ;;  %v3385_v34 = vld [vmem:[#allocation5 + $0x6c4] ss:$24 sps:$4 sm:$0xff]  }
  0x7e   :  { %1957 = vmatpush1.bf16.msra.mxu0 %v3316_v35  ;;  %1917 = vmatprep.subr.bf16.mxu1 %v3317_v39  ;;  %v3388_v35 = vld [vmem:[#allocation5 + $0xcc] ss:$24 sps:$4 sm:$0xff]   ;;  %v3394_v39 = vld [vmem:[#allocation5 + $0xfc] ss:$24 sps:$4 sm:$0xff]   ;;  %p3877_p1 = por %p3876_p0, %p3875_p13 }
  0x7f   :  { %1958 = vmatprep.subr.bf16.mxu0 %v3319_v40  ;;  %v3389_v40 = vld [vmem:[#allocation5 + $0x6f0] ss:$24 sps:$4 sm:$0xff]  }
  0x80   :  { %p3878_p2 = pnand %p3877_p1, %p3871_p12 }
  0x81   :  { %1918 = vmatpush1.bf16.msra.mxu1 %v3321_v41  ;;  %v3392_v41 = vld [vmem:[#allocation5 + $0xf8] ss:$24 sps:$4 sm:$0xff]  }
  0x82   :  { %1959 = vmatpush1.bf16.msra.mxu0 %v3322_v44  ;;  %1919 = vmatprep.subr.bf16.mxu1 %v3323_v45  ;;  %v3400_v44 = vld [vmem:[#allocation5 + $0x12c] ss:$24 sps:$4 sm:$0xff]   ;;  %v3395_v45 = vld [vmem:[#allocation5 + $0x720] ss:$24 sps:$4 sm:$0xff]  }
  0x83   :  { %1960 = vmatprep.subr.bf16.mxu0 %v3325_v46  ;;  %v3398_v46 = vld [vmem:[#allocation5 + $0x128] ss:$24 sps:$4 sm:$0xff]  }
  0x85   :  { %1920 = vmatpush1.bf16.msra.mxu1 %v3327_v47  ;;  %v3403_v47 = vld [vmem:[#allocation5 + $0x754] ss:$24 sps:$4 sm:$0xff]  }
  0x86   :  { %1961 = vmatpush1.bf16.msra.mxu0 %v3328_v48  ;;  %1921 = vmatprep.subr.bf16.mxu1 %v3329_v50  ;;  %v3406_v48 = vld [vmem:[#allocation5 + $0x15c] ss:$24 sps:$4 sm:$0xff]   ;;  %v3404_v50 = vld [vmem:[#allocation5 + $0x158] ss:$24 sps:$4 sm:$0xff]  }
  0x87   :  { %1962 = vmatprep.subr.bf16.mxu0 %v3331_v51  ;;  %v3409_v51 = vld [vmem:[#allocation5 + $0x784] ss:$24 sps:$4 sm:$0xff]  }
  0x89   :  { %1922 = vmatpush1.bf16.msra.mxu1 %v3333_v53  ;;  %v3407_v53 = vld [vmem:[#allocation5 + $0x780] ss:$24 sps:$4 sm:$0xff]  }
  0x8a   :  { %1963 = vmatpush1.bf16.msra.mxu0 %v3334_v56  ;;  %1923 = vmatprep.subr.bf16.mxu1 %v3335_v57  ;;  %v3418_v56 = vld [vmem:[#allocation5 + $0x1bc] ss:$24 sps:$4 sm:$0xff]   ;;  %v3413_v57 = vld [vmem:[#allocation5 + $0x7b0] ss:$24 sps:$4 sm:$0xff]  }
  0x8b   :  { %1964 = vmatprep.subr.bf16.mxu0 %v3337_v58  ;;  %v3416_v58 = vld [vmem:[#allocation5 + $0x1b8] ss:$24 sps:$4 sm:$0xff]  }
  0x8d   :  { %1924 = vmatpush1.bf16.msra.mxu1 %v3339_v61  ;;  %v3419_v61 = vld [vmem:[#allocation5 + $0x7e0] ss:$24 sps:$4 sm:$0xff]  }
  0x8e   :  { %1965 = vmatpush1.bf16.msra.mxu0 %v3340_v0  ;;  %1925 = vmatprep.subr.bf16.mxu1 %v3341_v1  ;;  %v3422_v0 = vld [vmem:[#allocation5 + $0x1e8] ss:$24 sps:$4 sm:$0xff]   ;;  %v3427_v1 = vld [vmem:[#allocation5 + $0x814] ss:$24 sps:$4 sm:$0xff]  }
  0x8f   :  { %1966 = vmatprep.subr.bf16.mxu0 %v3343_v2  ;;  %v3430_v2 = vld [vmem:[#allocation5 + $0x21c] ss:$24 sps:$4 sm:$0xff]  }
  0x91   :  { %1926 = vmatpush1.bf16.msra.mxu1 %v3345_v4  ;;  %v3425_v4 = vld [vmem:[#allocation5 + $0x810] ss:$24 sps:$4 sm:$0xff]  }
  0x92   :  { %1967 = vmatpush1.bf16.msra.mxu0 %v3346_v5  ;;  %1927 = vmatprep.subr.bf16.mxu1 %v3347_v6  ;;  %v3428_v5 = vld [vmem:[#allocation5 + $0x218] ss:$24 sps:$4 sm:$0xff]   ;;  %v3433_v6 = vld [vmem:[#allocation5 + $0x844] ss:$24 sps:$4 sm:$0xff]  }
  0x93   :  { %1968 = vmatprep.subr.bf16.mxu0 %v3349_v7  ;;  %v3436_v7 = vld [vmem:[#allocation5 + $0x24c] ss:$24 sps:$4 sm:$0xff]  }
  0x95   :  { %1928 = vmatpush1.bf16.msra.mxu1 %v3351_v8  ;;  %v3431_v8 = vld [vmem:[#allocation5 + $0x840] ss:$24 sps:$4 sm:$0xff]  }
  0x96   :  { %1969 = vmatpush1.bf16.msra.mxu0 %v3352_v9  ;;  %1929 = vmatprep.subr.bf16.mxu1 %v3353_v10  ;;  %v3434_v9 = vld [vmem:[#allocation5 + $0x248] ss:$24 sps:$4 sm:$0xff]   ;;  %v3439_v10 = vld [vmem:[#allocation5 + $0x874] ss:$24 sps:$4 sm:$0xff]  }
  0x97   :  { %1970 = vmatprep.subr.bf16.mxu0 %v3355_v11  ;;  %v3442_v11 = vld [vmem:[#allocation5 + $0x27c] ss:$24 sps:$4 sm:$0xff]  }
  0x99   :  { %1930 = vmatpush1.bf16.msra.mxu1 %v3357_v12  ;;  %v3437_v12 = vld [vmem:[#allocation5 + $0x870] ss:$24 sps:$4 sm:$0xff]  }
  0x9a   :  { %1971 = vmatpush1.bf16.msra.mxu0 %v3358_v14  ;;  %2022 = vmatprep.subr.bf16.mxu1 %v3364_v16  ;;  %v3440_v14 = vld [vmem:[#allocation5 + $0x278] ss:$24 sps:$4 sm:$0xff]   ;;  %v3448_v16 = vld [vmem:[#allocation5 + $0x2ac] ss:$24 sps:$4 sm:$0xff]  }
  0x9b   :  { %1981 = vmatprep.subr.bf16.mxu0 %v3361_v15  ;;  %v3445_v15 = vld [vmem:[#allocation5 + $0x8a4] ss:$24 sps:$4 sm:$0xff]  }
  0x9c   :  { %1932 = vmatmul.mubr.bf16.vlgmr.msra.gmra.mrb[0].mxu1 %v4021_v13 }
  0x9d   :  { %1973 = vmatmul.mubr.bf16.vlgmr.msra.gmra.mrb[0].mxu0 %v4025_v19  ;;  %2023 = vmatpush1.bf16.msra.mxu1 %v3362_v20  ;;  %v3451_v20 = vld [vmem:[#allocation5 + $0x8d4] ss:$24 sps:$4 sm:$0xff]  }
  0x9e   :  { %1982 = vmatpush1.bf16.msra.mxu0 %v3359_v18  ;;  %2024 = vmatprep.subr.bf16.mxu1 %v3370_v22  ;;  %v3446_v18 = vld [vmem:[#allocation5 + $0x2a8] ss:$24 sps:$4 sm:$0xff]  }
  0x9f   :  { %1983 = vmatprep.subr.bf16.mxu0 %v3367_v21  ;;  %2013 = vmatprep.mubr.bf16.mxu0 %v4028_v23  ;;  %v3454_v21 = vld [vmem:[#allocation5 + $0x2dc] ss:$24 sps:$4 sm:$0xff]   ;;  %v3449_v22 = vld [vmem:[#allocation5 + $0x8d0] ss:$24 sps:$4 sm:$0xff]  }
  0xa0   :  { %2054 = vmatprep.mubr.bf16.mxu1 %v4009_v62 }
  0xa1   :  { %2025 = vmatpush1.bf16.msra.mxu1 %v3368_v25  ;;  %v3458_v25 = vld [vmem:[#allocation5 + $0x30c] ss:$24 sps:$4 sm:$0xff]  }
  0xa2   :  { %1984 = vmatpush1.bf16.msra.mxu0 %v3365_v24  ;;  %2026 = vmatprep.subr.bf16.mxu1 %v3376_v27  ;;  %v3452_v24 = vld [vmem:[#allocation5 + $0x2d8] ss:$24 sps:$4 sm:$0xff]   ;;  %v3456_v27 = vld [vmem:[#allocation5 + $0x308] ss:$24 sps:$4 sm:$0xff]  }
  0xa3   :  { %1985 = vmatprep.subr.bf16.mxu0 %v3373_v26  ;;  %v3461_v26 = vld [vmem:[#allocation5 + $0x14] ss:$24 sps:$4 sm:$0xff]  }
  0xa5   :  { %2027 = vmatpush1.bf16.msra.mxu1 %v3374_v29  ;;  %v3464_v29 = vld [vmem:[#allocation5 + $0x33c] ss:$24 sps:$4 sm:$0xff]  }
  0xa6   :  { %1986 = vmatpush1.bf16.msra.mxu0 %v3371_v28  ;;  %2028 = vmatprep.subr.bf16.mxu1 %v3382_v31  ;;  %v3459_v28 = vld [vmem:[#allocation5 + $0x10] ss:$24 sps:$4 sm:$0xff]  }
  0xa7   :  { %1987 = vmatprep.subr.bf16.mxu0 %v3379_v30  ;;  %v3467_v30 = vld [vmem:[#allocation5 + $0x44] ss:$24 sps:$4 sm:$0xff]   ;;  %v3462_v31 = vld [vmem:[#allocation5 + $0x338] ss:$24 sps:$4 sm:$0xff]  }
  0xa9   :  { %2029 = vmatpush1.bf16.msra.mxu1 %v3380_v33  ;;  %v3470_v33 = vld [vmem:[#allocation5 + $0x36c] ss:$24 sps:$4 sm:$0xff]  }
  0xaa   :  { %1988 = vmatpush1.bf16.msra.mxu0 %v3377_v32  ;;  %2030 = vmatprep.subr.bf16.mxu1 %v3388_v35  ;;  %v3465_v32 = vld [vmem:[#allocation5 + $0x40] ss:$24 sps:$4 sm:$0xff]  }
  0xab   :  { %1989 = vmatprep.subr.bf16.mxu0 %v3385_v34  ;;  %v3473_v34 = vld [vmem:[#allocation5 + $0x74] ss:$24 sps:$4 sm:$0xff]   ;;  %v3468_v35 = vld [vmem:[#allocation5 + $0x368] ss:$24 sps:$4 sm:$0xff]  }
  0xad   :  { %2031 = vmatpush1.bf16.msra.mxu1 %v3386_v37  ;;  %v3476_v37 = vld [vmem:[#allocation5 + $0x39c] ss:$24 sps:$4 sm:$0xff]  }
  0xae   :  { %1990 = vmatpush1.bf16.msra.mxu0 %v3383_v36  ;;  %2032 = vmatprep.subr.bf16.mxu1 %v3394_v39  ;;  %v3471_v36 = vld [vmem:[#allocation5 + $0x70] ss:$24 sps:$4 sm:$0xff]  }
  0xaf   :  { %1991 = vmatprep.subr.bf16.mxu0 %v3391_v38  ;;  %v3479_v38 = vld [vmem:[#allocation5 + $0xa4] ss:$24 sps:$4 sm:$0xff]   ;;  %v3474_v39 = vld [vmem:[#allocation5 + $0x398] ss:$24 sps:$4 sm:$0xff]  }
  0xb1   :  { %2033 = vmatpush1.bf16.msra.mxu1 %v3392_v41  ;;  %v3482_v41 = vld [vmem:[#allocation5 + $0x3cc] ss:$24 sps:$4 sm:$0xff]  }
  0xb2   :  { %1992 = vmatpush1.bf16.msra.mxu0 %v3389_v40  ;;  %2034 = vmatprep.subr.bf16.mxu1 %v3400_v44  ;;  %v3477_v40 = vld [vmem:[#allocation5 + $0xa0] ss:$24 sps:$4 sm:$0xff]  }
  0xb3   :  { %1993 = vmatprep.subr.bf16.mxu0 %v3397_v43  ;;  %v3485_v43 = vld [vmem:[#allocation5 + $0xd4] ss:$24 sps:$4 sm:$0xff]   ;;  %v3480_v44 = vld [vmem:[#allocation5 + $0x3c8] ss:$24 sps:$4 sm:$0xff]  }
  0xb5   :  { %2035 = vmatpush1.bf16.msra.mxu1 %v3398_v46  ;;  %v3491_v46 = vld [vmem:[#allocation5 + $0x104] ss:$24 sps:$4 sm:$0xff]  }
  0xb6   :  { %1994 = vmatpush1.bf16.msra.mxu0 %v3395_v45  ;;  %2036 = vmatprep.subr.bf16.mxu1 %v3406_v48  ;;  %v3488_v45 = vld [vmem:[#allocation5 + $0x3fc] ss:$24 sps:$4 sm:$0xff]   ;;  %v3489_v48 = vld [vmem:[#allocation5 + $0x100] ss:$24 sps:$4 sm:$0xff]  }
  0xb7   :  { %1995 = vmatprep.subr.bf16.mxu0 %v3403_v47  ;;  %v3486_v47 = vld [vmem:[#allocation5 + $0x3f8] ss:$24 sps:$4 sm:$0xff]  }
  0xb9   :  { %2037 = vmatpush1.bf16.msra.mxu1 %v3404_v50  ;;  %v3497_v50 = vld [vmem:[#allocation5 + $0x134] ss:$24 sps:$4 sm:$0xff]  }
  0xba   :  { %1996 = vmatpush1.bf16.msra.mxu0 %v3401_v49  ;;  %2038 = vmatprep.subr.bf16.mxu1 %v3412_v52  ;;  %v3494_v49 = vld [vmem:[#allocation5 + $0x42c] ss:$24 sps:$4 sm:$0xff]   ;;  %v3495_v52 = vld [vmem:[#allocation5 + $0x130] ss:$24 sps:$4 sm:$0xff]  }
  0xbb   :  { %1997 = vmatprep.subr.bf16.mxu0 %v3409_v51  ;;  %v3492_v51 = vld [vmem:[#allocation5 + $0x428] ss:$24 sps:$4 sm:$0xff]  }
  0xbd   :  { %2039 = vmatpush1.bf16.msra.mxu1 %v3410_v54  ;;  %v3503_v54 = vld [vmem:[#allocation5 + $0x164] ss:$24 sps:$4 sm:$0xff]  }
  0xbe   :  { %1998 = vmatpush1.bf16.msra.mxu0 %v3407_v53  ;;  %2040 = vmatprep.subr.bf16.mxu1 %v3418_v56  ;;  %v3500_v53 = vld [vmem:[#allocation5 + $0x45c] ss:$24 sps:$4 sm:$0xff]   ;;  %v3501_v56 = vld [vmem:[#allocation5 + $0x160] ss:$24 sps:$4 sm:$0xff]  }
  0xbf   :  { %1999 = vmatprep.subr.bf16.mxu0 %v3415_v55  ;;  %v3498_v55 = vld [vmem:[#allocation5 + $0x458] ss:$24 sps:$4 sm:$0xff]  }
  0xc1   :  { %2041 = vmatpush1.bf16.msra.mxu1 %v3416_v58  ;;  %v3509_v58 = vld [vmem:[#allocation5 + $0x194] ss:$24 sps:$4 sm:$0xff]  }
  0xc2   :  { %2000 = vmatpush1.bf16.msra.mxu0 %v3413_v57  ;;  %2042 = vmatprep.subr.bf16.mxu1 %v3424_v60  ;;  %v3506_v57 = vld [vmem:[#allocation5 + $0x48c] ss:$24 sps:$4 sm:$0xff]   ;;  %v3507_v60 = vld [vmem:[#allocation5 + $0x190] ss:$24 sps:$4 sm:$0xff]  }
  0xc3   :  { %2001 = vmatprep.subr.bf16.mxu0 %v3421_v59  ;;  %v3504_v59 = vld [vmem:[#allocation5 + $0x488] ss:$24 sps:$4 sm:$0xff]  }
  0xc5   :  { %2043 = vmatpush1.bf16.msra.mxu1 %v3422_v0  ;;  %v3515_v0 = vld [vmem:[#allocation5 + $0x1c4] ss:$24 sps:$4 sm:$0xff]  }
  0xc6   :  { %2002 = vmatpush1.bf16.msra.mxu0 %v3419_v61  ;;  %2044 = vmatprep.subr.bf16.mxu1 %v3430_v2  ;;  %v3512_v61 = vld [vmem:[#allocation5 + $0x4bc] ss:$24 sps:$4 sm:$0xff]   ;;  %v3513_v2 = vld [vmem:[#allocation5 + $0x1c0] ss:$24 sps:$4 sm:$0xff]  }
  0xc7   :  { %2003 = vmatprep.subr.bf16.mxu0 %v3427_v1  ;;  %v3510_v1 = vld [vmem:[#allocation5 + $0x4b8] ss:$24 sps:$4 sm:$0xff]  }
  0xc9   :  { %2045 = vmatpush1.bf16.msra.mxu1 %v3428_v5  ;;  %v3521_v5 = vld [vmem:[#allocation5 + $0x1f4] ss:$24 sps:$4 sm:$0xff]  }
  0xca   :  { %2004 = vmatpush1.bf16.msra.mxu0 %v3425_v4  ;;  %2046 = vmatprep.subr.bf16.mxu1 %v3436_v7  ;;  %v3518_v4 = vld [vmem:[#allocation5 + $0x4ec] ss:$24 sps:$4 sm:$0xff]   ;;  %v3519_v7 = vld [vmem:[#allocation5 + $0x1f0] ss:$24 sps:$4 sm:$0xff]  }
  0xcb   :  { %2005 = vmatprep.subr.bf16.mxu0 %v3433_v6  ;;  %v3516_v6 = vld [vmem:[#allocation5 + $0x4e8] ss:$24 sps:$4 sm:$0xff]  }
  0xcd   :  { %2047 = vmatpush1.bf16.msra.mxu1 %v3434_v9  ;;  %v3527_v9 = vld [vmem:[#allocation5 + $0x224] ss:$24 sps:$4 sm:$0xff]  }
  0xce   :  { %2006 = vmatpush1.bf16.msra.mxu0 %v3431_v8  ;;  %2048 = vmatprep.subr.bf16.mxu1 %v3442_v11  ;;  %v3524_v8 = vld [vmem:[#allocation5 + $0x51c] ss:$24 sps:$4 sm:$0xff]   ;;  %v3525_v11 = vld [vmem:[#allocation5 + $0x220] ss:$24 sps:$4 sm:$0xff]  }
  0xcf   :  { %2007 = vmatprep.subr.bf16.mxu0 %v3439_v10  ;;  %v3522_v10 = vld [vmem:[#allocation5 + $0x518] ss:$24 sps:$4 sm:$0xff]  }
  0xd1   :  { %2049 = vmatpush1.bf16.msra.mxu1 %v3440_v14  ;;  %v3533_v14 = vld [vmem:[#allocation5 + $0x254] ss:$24 sps:$4 sm:$0xff]  }
  0xd2   :  { %2008 = vmatpush1.bf16.msra.mxu0 %v3437_v12  ;;  %2050 = vmatprep.subr.bf16.mxu1 %v3448_v16  ;;  %v3530_v12 = vld [vmem:[#allocation5 + $0x54c] ss:$24 sps:$4 sm:$0xff]   ;;  %v3531_v16 = vld [vmem:[#allocation5 + $0x250] ss:$24 sps:$4 sm:$0xff]  }
  0xd3   :  { %2009 = vmatprep.subr.bf16.mxu0 %v3445_v15  ;;  %v3528_v15 = vld [vmem:[#allocation5 + $0x548] ss:$24 sps:$4 sm:$0xff]  }
  0xd5   :  { %2051 = vmatpush1.bf16.msra.mxu1 %v3446_v18  ;;  %v3539_v18 = vld [vmem:[#allocation5 + $0x284] ss:$24 sps:$4 sm:$0xff]  }
  0xd6   :  { %2010 = vmatpush1.bf16.msra.mxu0 %v3443_v17  ;;  %2052 = vmatprep.subr.bf16.mxu1 %v3454_v21  ;;  %v3536_v17 = vld [vmem:[#allocation5 + $0x57c] ss:$24 sps:$4 sm:$0xff]   ;;  %v3537_v21 = vld [vmem:[#allocation5 + $0x280] ss:$24 sps:$4 sm:$0xff]  }
  0xd7   :  { %2011 = vmatprep.subr.bf16.mxu0 %v3451_v20  ;;  %v3534_v20 = vld [vmem:[#allocation5 + $0x578] ss:$24 sps:$4 sm:$0xff]  }
  0xd9   :  { %2053 = vmatpush1.bf16.msra.mxu1 %v3452_v24  ;;  %v3545_v24 = vld [vmem:[#allocation5 + $0x2b4] ss:$24 sps:$4 sm:$0xff]  }
  0xda   :  { %2012 = vmatpush1.bf16.msra.mxu0 %v3449_v22  ;;  %2063 = vmatprep.subr.bf16.mxu1 %v3458_v25  ;;  %v3542_v22 = vld [vmem:[#allocation5 + $0x5ac] ss:$24 sps:$4 sm:$0xff]   ;;  %v3540_v25 = vld [vmem:[#allocation5 + $0x5a8] ss:$24 sps:$4 sm:$0xff]  }
  0xdb   :  { %2145 = vmatprep.subr.bf16.mxu0 %v3461_v26  ;;  %v3543_v26 = vld [vmem:[#allocation5 + $0x2b0] ss:$24 sps:$4 sm:$0xff]  }
  0xdc   :  { %2055 = vmatmul.mubr.bf16.vlgmr.msra.gmra.mrb[4].mxu1 %v4021_v13 }
  0xdd   :  { %2014 = vmatmul.mubr.bf16.vlgmr.msra.gmra.mrb[0].mxu0 %v4012_v63  ;;  %2064 = vmatpush1.bf16.msra.mxu1 %v3456_v27  ;;  %v3548_v27 = vld [vmem:[#allocation5 + $0x5dc] ss:$24 sps:$4 sm:$0xff]  }
  0xde   :  { %2146 = vmatpush1.bf16.msra.mxu0 %v3459_v28  ;;  %2065 = vmatprep.subr.bf16.mxu1 %v3464_v29  ;;  %v3551_v28 = vld [vmem:[#allocation5 + $0x2e4] ss:$24 sps:$4 sm:$0xff]   ;;  %v3546_v29 = vld [vmem:[#allocation5 + $0x5d8] ss:$24 sps:$4 sm:$0xff]  }
  0xdf   :  { %2147 = vmatprep.subr.bf16.mxu0 %v3467_v30  ;;  %2095 = vmatprep.mubr.bf16.mxu1 %v4016_v3  ;;  %v3549_v30 = vld [vmem:[#allocation5 + $0x2e0] ss:$24 sps:$4 sm:$0xff]  }
  0xe0   :  { %2177 = vmatprep.mubr.bf16.mxu0 %v4009_v62  ;;  %v3483_v62 = vld [vmem:[#allocation5 + $0xd0] ss:$24 sps:$4 sm:$0xff]  }
  0xe1   :  { %2066 = vmatpush1.bf16.msra.mxu1 %v3462_v31  ;;  %v3554_v31 = vld [vmem:[#allocation5 + $0x60c] ss:$24 sps:$4 sm:$0xff]  }
  0xe2   :  { %2148 = vmatpush1.bf16.msra.mxu0 %v3465_v32  ;;  %2067 = vmatprep.subr.bf16.mxu1 %v3470_v33  ;;  %v3557_v32 = vld [vmem:[#allocation5 + $0x314] ss:$24 sps:$4 sm:$0xff]   ;;  %v3552_v33 = vld [vmem:[#allocation5 + $0x608] ss:$24 sps:$4 sm:$0xff]  }
  0xe3   :  { %2149 = vmatprep.subr.bf16.mxu0 %v3473_v34  ;;  %v3555_v34 = vld [vmem:[#allocation5 + $0x310] ss:$24 sps:$4 sm:$0xff]  }
  0xe5   :  { %2068 = vmatpush1.bf16.msra.mxu1 %v3468_v35  ;;  %v3560_v35 = vld [vmem:[#allocation5 + $0x63c] ss:$24 sps:$4 sm:$0xff]  }
  0xe6   :  { %2150 = vmatpush1.bf16.msra.mxu0 %v3471_v36  ;;  %2069 = vmatprep.subr.bf16.mxu1 %v3476_v37  ;;  %v3563_v36 = vld [vmem:[#allocation5 + $0x344] ss:$24 sps:$4 sm:$0xff]   ;;  %v3558_v37 = vld [vmem:[#allocation5 + $0x638] ss:$24 sps:$4 sm:$0xff]  }
  0xe7   :  { %2151 = vmatprep.subr.bf16.mxu0 %v3479_v38  ;;  %v3561_v38 = vld [vmem:[#allocation5 + $0x340] ss:$24 sps:$4 sm:$0xff]  }
  0xe9   :  { %2070 = vmatpush1.bf16.msra.mxu1 %v3474_v39  ;;  %v3566_v39 = vld [vmem:[#allocation5 + $0x66c] ss:$24 sps:$4 sm:$0xff]  }
  0xea   :  { %2152 = vmatpush1.bf16.msra.mxu0 %v3477_v40  ;;  %2071 = vmatprep.subr.bf16.mxu1 %v3482_v41  ;;  %v3569_v40 = vld [vmem:[#allocation5 + $0x374] ss:$24 sps:$4 sm:$0xff]   ;;  %v3564_v41 = vld [vmem:[#allocation5 + $0x668] ss:$24 sps:$4 sm:$0xff]  }
  0xeb   :  { %2153 = vmatprep.subr.bf16.mxu0 %v3485_v43  ;;  %v3567_v43 = vld [vmem:[#allocation5 + $0x370] ss:$24 sps:$4 sm:$0xff]  }
  0xed   :  { %2072 = vmatpush1.bf16.msra.mxu1 %v3480_v44  ;;  %v3572_v44 = vld [vmem:[#allocation5 + $0x69c] ss:$24 sps:$4 sm:$0xff]  }
  0xee   :  { %2154 = vmatpush1.bf16.msra.mxu0 %v3483_v62  ;;  %2073 = vmatprep.subr.bf16.mxu1 %v3488_v45  ;;  %v3575_v62 = vld [vmem:[#allocation5 + $0x3a4] ss:$24 sps:$4 sm:$0xff]   ;;  %v3573_v45 = vld [vmem:[#allocation5 + $0x3a0] ss:$24 sps:$4 sm:$0xff]  }
  0xef   :  { %2155 = vmatprep.subr.bf16.mxu0 %v3491_v46  ;;  %v3578_v46 = vld [vmem:[#allocation5 + $0x6cc] ss:$24 sps:$4 sm:$0xff]  }
  0xf1   :  { %2074 = vmatpush1.bf16.msra.mxu1 %v3486_v47  ;;  %v3581_v47 = vld [vmem:[#allocation5 + $0x3d4] ss:$24 sps:$4 sm:$0xff]  }
  0xf2   :  { %2156 = vmatpush1.bf16.msra.mxu0 %v3489_v48  ;;  %2075 = vmatprep.subr.bf16.mxu1 %v3494_v49  ;;  %v3576_v48 = vld [vmem:[#allocation5 + $0x6c8] ss:$24 sps:$4 sm:$0xff]  }
  0xf3   :  { %2157 = vmatprep.subr.bf16.mxu0 %v3497_v50  ;;  %v3579_v49 = vld [vmem:[#allocation5 + $0x3d0] ss:$24 sps:$4 sm:$0xff]   ;;  %v3584_v50 = vld [vmem:[#allocation5 + $0x6fc] ss:$24 sps:$4 sm:$0xff]  }
  0xf5   :  { %2076 = vmatpush1.bf16.msra.mxu1 %v3492_v51  ;;  %v3587_v51 = vld [vmem:[#allocation5 + $0x404] ss:$24 sps:$4 sm:$0xff]  }
  0xf6   :  { %2158 = vmatpush1.bf16.msra.mxu0 %v3495_v52  ;;  %2077 = vmatprep.subr.bf16.mxu1 %v3500_v53  ;;  %v3585_v52 = vld [vmem:[#allocation5 + $0x400] ss:$24 sps:$4 sm:$0xff]   ;;  %v3590_v53 = vld [vmem:[#allocation5 + $0x72c] ss:$24 sps:$4 sm:$0xff]  }
  0xf7   :  { %2159 = vmatprep.subr.bf16.mxu0 %v3503_v54  ;;  %v3593_v54 = vld [vmem:[#allocation5 + $0x434] ss:$24 sps:$4 sm:$0xff]  }
  0xf9   :  { %2078 = vmatpush1.bf16.msra.mxu1 %v3498_v55  ;;  %v3588_v55 = vld [vmem:[#allocation5 + $0x728] ss:$24 sps:$4 sm:$0xff]  }
  0xfa   :  { %2160 = vmatpush1.bf16.msra.mxu0 %v3501_v56  ;;  %2079 = vmatprep.subr.bf16.mxu1 %v3506_v57  ;;  %v3591_v56 = vld [vmem:[#allocation5 + $0x430] ss:$24 sps:$4 sm:$0xff]   ;;  %v3596_v57 = vld [vmem:[#allocation5 + $0x75c] ss:$24 sps:$4 sm:$0xff]  }
  0xfb   :  { %2161 = vmatprep.subr.bf16.mxu0 %v3509_v58  ;;  %v3599_v58 = vld [vmem:[#allocation5 + $0x464] ss:$24 sps:$4 sm:$0xff]  }
  0xfd   :  { %2080 = vmatpush1.bf16.msra.mxu1 %v3504_v59  ;;  %v3594_v59 = vld [vmem:[#allocation5 + $0x758] ss:$24 sps:$4 sm:$0xff]  }
  0xfe   :  { %2162 = vmatpush1.bf16.msra.mxu0 %v3507_v60  ;;  %2081 = vmatprep.subr.bf16.mxu1 %v3512_v61  ;;  %v3597_v60 = vld [vmem:[#allocation5 + $0x460] ss:$24 sps:$4 sm:$0xff]   ;;  %v3602_v61 = vld [vmem:[#allocation5 + $0x78c] ss:$24 sps:$4 sm:$0xff]  }
  0xff   :  { %2163 = vmatprep.subr.bf16.mxu0 %v3515_v0  ;;  %v3605_v0 = vld [vmem:[#allocation5 + $0x494] ss:$24 sps:$4 sm:$0xff]  }
 0x101   :  { %2082 = vmatpush1.bf16.msra.mxu1 %v3510_v1  ;;  %v3600_v1 = vld [vmem:[#allocation5 + $0x788] ss:$24 sps:$4 sm:$0xff]  }
 0x102   :  { %2164 = vmatpush1.bf16.msra.mxu0 %v3513_v2  ;;  %2083 = vmatprep.subr.bf16.mxu1 %v3518_v4  ;;  %v3603_v2 = vld [vmem:[#allocation5 + $0x490] ss:$24 sps:$4 sm:$0xff]   ;;  %v3608_v4 = vld [vmem:[#allocation5 + $0x7bc] ss:$24 sps:$4 sm:$0xff]  }
 0x103   :  { %2165 = vmatprep.subr.bf16.mxu0 %v3521_v5  ;;  %v3611_v5 = vld [vmem:[#allocation5 + $0x4c4] ss:$24 sps:$4 sm:$0xff]  }
 0x105   :  { %2084 = vmatpush1.bf16.msra.mxu1 %v3516_v6  ;;  %v3606_v6 = vld [vmem:[#allocation5 + $0x7b8] ss:$24 sps:$4 sm:$0xff]  }
 0x106   :  { %2166 = vmatpush1.bf16.msra.mxu0 %v3519_v7  ;;  %2085 = vmatprep.subr.bf16.mxu1 %v3524_v8  ;;  %v3609_v7 = vld [vmem:[#allocation5 + $0x4c0] ss:$24 sps:$4 sm:$0xff]   ;;  %v3614_v8 = vld [vmem:[#allocation5 + $0x7ec] ss:$24 sps:$4 sm:$0xff]  }
 0x107   :  { %2167 = vmatprep.subr.bf16.mxu0 %v3527_v9  ;;  %v3617_v9 = vld [vmem:[#allocation5 + $0x4f4] ss:$24 sps:$4 sm:$0xff]  }
 0x109   :  { %2086 = vmatpush1.bf16.msra.mxu1 %v3522_v10  ;;  %v3612_v10 = vld [vmem:[#allocation5 + $0x7e8] ss:$24 sps:$4 sm:$0xff]  }
 0x10a   :  { %2168 = vmatpush1.bf16.msra.mxu0 %v3525_v11  ;;  %2087 = vmatprep.subr.bf16.mxu1 %v3530_v12  ;;  %v3615_v11 = vld [vmem:[#allocation5 + $0x4f0] ss:$24 sps:$4 sm:$0xff]   ;;  %v3620_v12 = vld [vmem:[#allocation5 + $0x81c] ss:$24 sps:$4 sm:$0xff]  }
 0x10b   :  { %2169 = vmatprep.subr.bf16.mxu0 %v3533_v14  ;;  %v3623_v14 = vld [vmem:[#allocation5 + $0x524] ss:$24 sps:$4 sm:$0xff]  }
 0x10d   :  { %2088 = vmatpush1.bf16.msra.mxu1 %v3528_v15  ;;  %v3618_v15 = vld [vmem:[#allocation5 + $0x818] ss:$24 sps:$4 sm:$0xff]  }
 0x10e   :  { %2170 = vmatpush1.bf16.msra.mxu0 %v3531_v16  ;;  %2089 = vmatprep.subr.bf16.mxu1 %v3536_v17  ;;  %v3621_v16 = vld [vmem:[#allocation5 + $0x520] ss:$24 sps:$4 sm:$0xff]   ;;  %v3626_v17 = vld [vmem:[#allocation5 + $0x84c] ss:$24 sps:$4 sm:$0xff]  }
 0x10f   :  { %2171 = vmatprep.subr.bf16.mxu0 %v3539_v18  ;;  %v3629_v18 = vld [vmem:[#allocation5 + $0x554] ss:$24 sps:$4 sm:$0xff]  }
 0x111   :  { %2090 = vmatpush1.bf16.msra.mxu1 %v3534_v20  ;;  %v3624_v20 = vld [vmem:[#allocation5 + $0x848] ss:$24 sps:$4 sm:$0xff]  }
 0x112   :  { %2172 = vmatpush1.bf16.msra.mxu0 %v3537_v21  ;;  %2091 = vmatprep.subr.bf16.mxu1 %v3542_v22  ;;  %v3627_v21 = vld [vmem:[#allocation5 + $0x550] ss:$24 sps:$4 sm:$0xff]   ;;  %v3632_v22 = vld [vmem:[#allocation5 + $0x87c] ss:$24 sps:$4 sm:$0xff]  }
 0x113   :  { %2173 = vmatprep.subr.bf16.mxu0 %v3545_v24  ;;  %v3635_v24 = vld [vmem:[#allocation5 + $0x584] ss:$24 sps:$4 sm:$0xff]  }
 0x115   :  { %2092 = vmatpush1.bf16.msra.mxu1 %v3540_v25  ;;  %v3630_v25 = vld [vmem:[#allocation5 + $0x878] ss:$24 sps:$4 sm:$0xff]  }
 0x116   :  { %2174 = vmatpush1.bf16.msra.mxu0 %v3543_v26  ;;  %2093 = vmatprep.subr.bf16.mxu1 %v3548_v27  ;;  %v3633_v26 = vld [vmem:[#allocation5 + $0x580] ss:$24 sps:$4 sm:$0xff]   ;;  %v3638_v27 = vld [vmem:[#allocation5 + $0x8ac] ss:$24 sps:$4 sm:$0xff]  }
 0x117   :  { %2175 = vmatprep.subr.bf16.mxu0 %v3551_v28  ;;  %v3641_v28 = vld [vmem:[#allocation5 + $0x5b4] ss:$24 sps:$4 sm:$0xff]  }
 0x119   :  { %2094 = vmatpush1.bf16.msra.mxu1 %v3546_v29  ;;  %v3636_v29 = vld [vmem:[#allocation5 + $0x8a8] ss:$24 sps:$4 sm:$0xff]  }
 0x11a   :  { %2176 = vmatpush1.bf16.msra.mxu0 %v3549_v30  ;;  %2104 = vmatprep.subr.bf16.mxu1 %v3554_v31  ;;  %v3639_v30 = vld [vmem:[#allocation5 + $0x5b0] ss:$24 sps:$4 sm:$0xff]   ;;  %v3644_v31 = vld [vmem:[#allocation5 + $0x8dc] ss:$24 sps:$4 sm:$0xff]  }
 0x11b   :  { %2186 = vmatprep.subr.bf16.mxu0 %v3557_v32  ;;  %v3647_v32 = vld [vmem:[#allocation5 + $0x5e4] ss:$24 sps:$4 sm:$0xff]  }
 0x11c   :  { %2096 = vmatmul.mubr.bf16.vlgmr.msra.gmra.mrb[4].mxu1 %v4025_v19 }
 0x11d   :  { %2178 = vmatmul.mubr.bf16.vlgmr.msra.gmra.mrb[4].mxu0 %v4021_v13  ;;  %2105 = vmatpush1.bf16.msra.mxu1 %v3552_v33  ;;  %v3570_v13 = vld [vmem:[#allocation5 + $0x698] ss:$24 sps:$4 sm:$0xff]  }
 0x11e   :  { %2187 = vmatpush1.bf16.msra.mxu0 %v3555_v34  ;;  %2106 = vmatprep.subr.bf16.mxu1 %v3560_v35  ;;  %v3642_v33 = vld [vmem:[#allocation5 + $0x8d8] ss:$24 sps:$4 sm:$0xff]   ;;  %v3650_v35 = vld [vmem:[#allocation5 + $0x614] ss:$24 sps:$4 sm:$0xff]  }
 0x11f   :  { %2188 = vmatprep.subr.bf16.mxu0 %v3563_v36  ;;  %2136 = vmatprep.mubr.bf16.mxu1 %v4028_v23  ;;  %v3645_v34 = vld [vmem:[#allocation5 + $0x5e0] ss:$24 sps:$4 sm:$0xff]   ;;  %v3696_v36 = vld [vmem:[#allocation8 + $0x40] sm:$0xff]  }
 0x120   :  { %2218 = vmatprep.mubr.bf16.mxu0 %v4016_v3  ;;  %v3582_v3 = vld [vmem:[#allocation5 + $0x6f8] ss:$24 sps:$4 sm:$0xff]  }
 0x121   :  { %2107 = vmatpush1.bf16.msra.mxu1 %v3558_v37  ;;  %v3648_v37 = vld [vmem:[#allocation5 + $0x610] ss:$24 sps:$4 sm:$0xff]  }
 0x122   :  { %2189 = vmatpush1.bf16.msra.mxu0 %v3561_v38  ;;  %2108 = vmatprep.subr.bf16.mxu1 %v3566_v39  ;;  %v3653_v38 = vld [vmem:[#allocation5 + $0x644] ss:$24 sps:$4 sm:$0xff]  }
 0x123   :  { %2190 = vmatprep.subr.bf16.mxu0 %v3569_v40  ;;  %v3697_v39 = vld [vmem:[#allocation8] sm:$0xff]   ;;  %v3698_v40 = vld [vmem:[#allocation8 + $0x48] sm:$0xff]  }
 0x125   :  { %2109 = vmatpush1.bf16.msra.mxu1 %v3564_v41  ;;  %v3651_v41 = vld [vmem:[#allocation5 + $0x640] ss:$24 sps:$4 sm:$0xff]  }
 0x126   :  { %2191 = vmatpush1.bf16.msra.mxu0 %v3567_v43  ;;  %2110 = vmatprep.subr.bf16.mxu1 %v3572_v44  ;;  %v3656_v43 = vld [vmem:[#allocation5 + $0x674] ss:$24 sps:$4 sm:$0xff]  }
 0x127   :  { %2192 = vmatprep.subr.bf16.mxu0 %v3575_v62  ;;  %v3699_v44 = vld [vmem:[#allocation8 + $0x8] sm:$0xff]   ;;  %v3700_v62 = vld [vmem:[#allocation8 + $0x50] sm:$0xff]  }
 0x129   :  { %2111 = vmatpush1.bf16.msra.mxu1 %v3570_v13  ;;  %v3654_v13 = vld [vmem:[#allocation5 + $0x670] ss:$24 sps:$4 sm:$0xff]  }
 0x12a   :  { %2193 = vmatpush1.bf16.msra.mxu0 %v3573_v45  ;;  %2112 = vmatprep.subr.bf16.mxu1 %v3578_v46  ;;  %v3659_v45 = vld [vmem:[#allocation5 + $0x6a4] ss:$24 sps:$4 sm:$0xff]  }
 0x12b   :  { %2194 = vmatprep.subr.bf16.mxu0 %v3581_v47  ;;  %v3701_v46 = vld [vmem:[#allocation8 + $0x10] sm:$0xff]   ;;  %v3702_v47 = vld [vmem:[#allocation8 + $0x58] sm:$0xff]  }
 0x12d   :  { %2113 = vmatpush1.bf16.msra.mxu1 %v3576_v48  ;;  %v3662_v48 = vld [vmem:[#allocation5 + $0x6d4] ss:$24 sps:$4 sm:$0xff]  }
 0x12e   :  { %2195 = vmatpush1.bf16.msra.mxu0 %v3579_v49  ;;  %2114 = vmatprep.subr.bf16.mxu1 %v3584_v50  ;;  %v3704_v49 = vld [vmem:[#allocation8 + $0x60] sm:$0xff]  }
 0x12f   :  { %2196 = vmatprep.subr.bf16.mxu0 %v3587_v51  ;;  %v3660_v50 = vld [vmem:[#allocation5 + $0x6d0] ss:$24 sps:$4 sm:$0xff]   ;;  %v3665_v51 = vld [vmem:[#allocation5 + $0x704] ss:$24 sps:$4 sm:$0xff]  }
 0x131   :  { %2115 = vmatpush1.bf16.msra.mxu1 %v3582_v3  ;;  %v3705_v3 = vld [vmem:[#allocation8 + $0x20] sm:$0xff]  }
 0x132   :  { %2197 = vmatpush1.bf16.msra.mxu0 %v3585_v52  ;;  %2116 = vmatprep.subr.bf16.mxu1 %v3590_v53  ;;  %v3706_v52 = vld [vmem:[#allocation8 + $0x68] sm:$0xff]   ;;  %v3663_v53 = vld [vmem:[#allocation5 + $0x700] ss:$24 sps:$4 sm:$0xff]  }
 0x133   :  { %2198 = vmatprep.subr.bf16.mxu0 %v3593_v54  ;;  %v3668_v54 = vld [vmem:[#allocation5 + $0x734] ss:$24 sps:$4 sm:$0xff]  }
 0x135   :  { %2117 = vmatpush1.bf16.msra.mxu1 %v3588_v55  ;;  %v3707_v55 = vld [vmem:[#allocation8 + $0x28] sm:$0xff]  }
 0x136   :  { %2199 = vmatpush1.bf16.msra.mxu0 %v3591_v56  ;;  %2118 = vmatprep.subr.bf16.mxu1 %v3596_v57  ;;  %v3708_v57 = vld [vmem:[#allocation8 + $0x70] sm:$0xff]  }
 0x137   :  { %2200 = vmatprep.subr.bf16.mxu0 %v3599_v58 }
 0x139   :  { %2119 = vmatpush1.bf16.msra.mxu1 %v3594_v59  ;;  %v3666_v59 = vld [vmem:[#allocation5 + $0x730] ss:$24 sps:$4 sm:$0xff]  }
 0x13a   :  { %2201 = vmatpush1.bf16.msra.mxu0 %v3597_v60  ;;  %2120 = vmatprep.subr.bf16.mxu1 %v3602_v61  ;;  %v3671_v61 = vld [vmem:[#allocation5 + $0x764] ss:$24 sps:$4 sm:$0xff]  }
 0x13b   :  { %2202 = vmatprep.subr.bf16.mxu0 %v3605_v0 }
 0x13d   :  { %2121 = vmatpush1.bf16.msra.mxu1 %v3600_v1  ;;  %v3709_v1 = vld [vmem:[#allocation8 + $0x30] sm:$0xff]  }
 0x13e   :  { %2203 = vmatpush1.bf16.msra.mxu0 %v3603_v2  ;;  %2122 = vmatprep.subr.bf16.mxu1 %v3608_v4  ;;  %v3710_v2 = vld [vmem:[#allocation8 + $0x78] sm:$0xff]  }
 0x13f   :  { %2204 = vmatprep.subr.bf16.mxu0 %v3611_v5  ;;  %v3669_v4 = vld [vmem:[#allocation5 + $0x760] ss:$24 sps:$4 sm:$0xff]   ;;  %v3674_v5 = vld [vmem:[#allocation5 + $0x794] ss:$24 sps:$4 sm:$0xff]  }
 0x141   :  { %2123 = vmatpush1.bf16.msra.mxu1 %v3606_v6  ;;  %v3711_v6 = vld [vmem:[#allocation8 + $0x38] sm:$0xff]  }
 0x142   :  { %2205 = vmatpush1.bf16.msra.mxu0 %v3609_v7  ;;  %2124 = vmatprep.subr.bf16.mxu1 %v3614_v8  ;;  %v3712_v7 = vld [vmem:[#allocation8 + $0xc0] sm:$0xff]  }
 0x143   :  { %2206 = vmatprep.subr.bf16.mxu0 %v3617_v9  ;;  %v3672_v8 = vld [vmem:[#allocation5 + $0x790] ss:$24 sps:$4 sm:$0xff]   ;;  %v3677_v9 = vld [vmem:[#allocation5 + $0x7c4] ss:$24 sps:$4 sm:$0xff]  }
 0x145   :  { %2125 = vmatpush1.bf16.msra.mxu1 %v3612_v10  ;;  %v3675_v10 = vld [vmem:[#allocation5 + $0x7c0] ss:$24 sps:$4 sm:$0xff]  }
 0x146   :  { %2207 = vmatpush1.bf16.msra.mxu0 %v3615_v11  ;;  %2126 = vmatprep.subr.bf16.mxu1 %v3620_v12  ;;  %v3680_v11 = vld [vmem:[#allocation5 + $0x7f4] ss:$24 sps:$4 sm:$0xff]   ;;  %v3678_v12 = vld [vmem:[#allocation5 + $0x7f0] ss:$24 sps:$4 sm:$0xff]  }
 0x147   :  { %2208 = vmatprep.subr.bf16.mxu0 %v3623_v14  ;;  %v3683_v14 = vld [vmem:[#allocation5 + $0x824] ss:$24 sps:$4 sm:$0xff]  }
 0x149   :  { %2127 = vmatpush1.bf16.msra.mxu1 %v3618_v15  ;;  %v3681_v15 = vld [vmem:[#allocation5 + $0x820] ss:$24 sps:$4 sm:$0xff]  }
 0x14a   :  { %2209 = vmatpush1.bf16.msra.mxu0 %v3621_v16  ;;  %2128 = vmatprep.subr.bf16.mxu1 %v3626_v17  ;;  %v3686_v16 = vld [vmem:[#allocation5 + $0x854] ss:$24 sps:$4 sm:$0xff]   ;;  %v3684_v17 = vld [vmem:[#allocation5 + $0x850] ss:$24 sps:$4 sm:$0xff]  }
 0x14b   :  { %2210 = vmatprep.subr.bf16.mxu0 %v3629_v18  ;;  %v3689_v18 = vld [vmem:[#allocation5 + $0x884] ss:$24 sps:$4 sm:$0xff]  }
 0x14d   :  { %2129 = vmatpush1.bf16.msra.mxu1 %v3624_v20  ;;  %v3687_v20 = vld [vmem:[#allocation5 + $0x880] ss:$24 sps:$4 sm:$0xff]  }
 0x14e   :  { %2211 = vmatpush1.bf16.msra.mxu0 %v3627_v21  ;;  %2130 = vmatprep.subr.bf16.mxu1 %v3632_v22  ;;  %v3692_v21 = vld [vmem:[#allocation5 + $0x8b4] ss:$24 sps:$4 sm:$0xff]   ;;  %v3690_v22 = vld [vmem:[#allocation5 + $0x8b0] ss:$24 sps:$4 sm:$0xff]  }
 0x14f   :  { %2212 = vmatprep.subr.bf16.mxu0 %v3635_v24  ;;  %v3695_v24 = vld [vmem:[#allocation5 + $0x8e4] ss:$24 sps:$4 sm:$0xff]  }
 0x151   :  { %2131 = vmatpush1.bf16.msra.mxu1 %v3630_v25  ;;  %v3693_v25 = vld [vmem:[#allocation5 + $0x8e0] ss:$24 sps:$4 sm:$0xff]  }
 0x152   :  { %2213 = vmatpush1.bf16.msra.mxu0 %v3633_v26  ;;  %2132 = vmatprep.subr.bf16.mxu1 %v3638_v27  ;;  %v377_v26 = vsub.s32 0, %v4001_v42  ;;  %v4047_v27 = vld [vmem:[#allocation7] sm:$0x3f] }
 0x153   :  { %2214 = vmatprep.subr.bf16.mxu0 %v3641_v28  ;;  %v381_v28 = vsub.s32 1, %v4001_v42 }
 0x155   :  { %2133 = vmatpush1.bf16.msra.mxu1 %v3636_v29  ;;  %v378_v29 = vrot.slane %v4047_v27, %v377_v26  ;;  %v397_v26 = vsub.s32 5, %v4001_v42 }
 0x156   :  { %2215 = vmatpush1.bf16.msra.mxu0 %v3639_v30  ;;  %2134 = vmatprep.subr.bf16.mxu1 %v3644_v31  ;;  %v382_v30 = vrot.slane %v4047_v27, %v381_v28 }
 0x157   :  { %2216 = vmatprep.subr.bf16.mxu0 %v3647_v32 }
 0x159   :  { %2135 = vmatpush1.bf16.msra.mxu1 %v3642_v33 }
 0x15a   :  { %2217 = vmatpush1.bf16.msra.mxu0 %v3645_v34  ;;  %3158 = vmatprep.subr.bf16.mxu1 %v3696_v36 }
 0x15b   :  { %2227 = vmatprep.subr.bf16.mxu0 %v3650_v35 }
 0x15c   :  { %2137 = vmatmul.mubr.bf16.vlgmr.msra.gmra.mrb[4].mxu1 %v4012_v63 }
 0x15d   :  { %2219 = vmatmul.mubr.bf16.vlgmr.msra.gmra.mrb[4].mxu0 %v4025_v19  ;;  %3159 = vmatpush3.bf16.msra.mxu1 %v3697_v39  ;;  %v3657_v19 = vld [vmem:[#allocation5 + $0x6a0] ss:$24 sps:$4 sm:$0xff]  }
 0x15e   :  { %2228 = vmatpush1.bf16.msra.mxu0 %v3648_v37  ;;  %2259 = vmatprep.mubr.bf16.mxu0 %v4028_v23  ;;  %v3703_v23 = vld [vmem:[#allocation8 + $0x18] sm:$0xff]  }
 0x15f   :  { %2229 = vmatprep.subr.bf16.mxu0 %v3653_v38  ;;  %3160 = vmatprep.subr.bf16.mxu1 %v3698_v40 }
 0x161   :  { %3161 = vmatpush3.bf16.msra.mxu1 %v3699_v44  ;;  %v3714_v44 = vld [vmem:[#allocation8 + $0xc8] sm:$0xff]  }
 0x162   :  { %2230 = vmatpush1.bf16.msra.mxu0 %v3651_v41  ;;  %3162 = vmatprep.subr.bf16.mxu1 %v3700_v62  ;;  %v3713_v41 = vld [vmem:[#allocation8 + $0x80] sm:$0xff]   ;;  %v3715_v62 = vld [vmem:[#allocation8 + $0x88] sm:$0xff]  }
 0x163   :  { %2231 = vmatprep.subr.bf16.mxu0 %v3656_v43 }
 0x165   :  { %3163 = vmatpush3.bf16.msra.mxu1 %v3701_v46  ;;  %v3718_v46 = vld [vmem:[#allocation8 + $0xd8] sm:$0xff]  }
 0x166   :  { %2232 = vmatpush1.bf16.msra.mxu0 %v3654_v13  ;;  %3164 = vmatprep.subr.bf16.mxu1 %v3702_v47  ;;  %v3716_v13 = vld [vmem:[#allocation8 + $0xd0] sm:$0xff]   ;;  %v3719_v47 = vld [vmem:[#allocation8 + $0x98] sm:$0xff]  }
 0x167   :  { %2233 = vmatprep.subr.bf16.mxu0 %v3659_v45  ;;  %v3717_v45 = vld [vmem:[#allocation8 + $0x90] sm:$0xff]  }
 0x169   :  { %3165 = vmatpush3.bf16.msra.mxu1 %v3703_v23  ;;  %v3722_v23 = vld [vmem:[#allocation8 + $0xe8] sm:$0xff]  }
 0x16a   :  { %2234 = vmatpush1.bf16.msra.mxu0 %v3657_v19  ;;  %3166 = vmatprep.subr.bf16.mxu1 %v3704_v49  ;;  %v3720_v19 = vld [vmem:[#allocation8 + $0xe0] sm:$0xff]   ;;  %v3723_v49 = vld [vmem:[#allocation8 + $0xa8] sm:$0xff]  }
 0x16b   :  { %2235 = vmatprep.subr.bf16.mxu0 %v3662_v48  ;;  %v3721_v48 = vld [vmem:[#allocation8 + $0xa0] sm:$0xff]  }
 0x16d   :  { %3167 = vmatpush3.bf16.msra.mxu1 %v3705_v3  ;;  %v3726_v3 = vld [vmem:[#allocation8 + $0xf8] sm:$0xff]  }
 0x16e   :  { %2236 = vmatpush1.bf16.msra.mxu0 %v3660_v50  ;;  %3168 = vmatprep.subr.bf16.mxu1 %v3706_v52  ;;  %v3724_v50 = vld [vmem:[#allocation8 + $0xf0] sm:$0xff]   ;;  %v3727_v52 = vld [vmem:[#allocation8 + $0xb8] sm:$0xff]  }
 0x16f   :  { %2237 = vmatprep.subr.bf16.mxu0 %v3665_v51  ;;  %v1933_v56 = vpop.f32.mrb[0].mxu1  ;;  %v3725_v51 = vld [vmem:[#allocation8 + $0xb0] sm:$0xff]  }
 0x170   :  { %v1935_v58 = vpop.f32.mrb[1].mxu1  ;;  %v1934_v31 = vadd.f32 %v1933_v56, %v378_v29  ;;  %v398_v29 = vrot.slane %v4047_v27, %v397_v26 }
 0x171   :  { %v1937_v60 = vpop.f32.mrb[2].mxu1  ;;  %3169 = vmatpush3.bf16.msra.mxu1 %v3707_v55  ;;  %v1936_v32 = vadd.f32 %v1935_v58, %v382_v30  ;;  %v389_v55 = vsub.s32 3, %v4001_v42 }
 0x172   :  { %2238 = vmatpush1.bf16.msra.mxu0 %v3663_v53  ;;  %v1938_v0 = vpop.f32.mrb[3].mxu1  ;;  %3170 = vmatprep.subr.bf16.mxu1 %v3708_v57  ;;  %v3728_v53 = vld [vmem:[#allocation8 + $0x140] sm:$0xff]  }
 0x173   :  { %2239 = vmatprep.subr.bf16.mxu0 %v3668_v54  ;;  %v385_v54 = vsub.s32 2, %v4001_v42  ;;  %v390_v57 = vrot.slane %v4047_v27, %v389_v55 }
 0x175   :  { %3171 = vmatpush3.bf16.msra.mxu1 %v3709_v1  ;;  %v386_v56 = vrot.slane %v4047_v27, %v385_v54 }
 0x176   :  { %2240 = vmatpush1.bf16.msra.mxu0 %v3666_v59  ;;  %3172 = vmatprep.subr.bf16.mxu1 %v3710_v2 }
 0x177   :  { %2241 = vmatprep.subr.bf16.mxu0 %v3671_v61 }
 0x179   :  { %3173 = vmatpush3.bf16.msra.mxu1 %v3711_v6  ;;  %v3729_v6 = vld [vmem:[#allocation8 + $0x100] sm:$0xff]  }
 0x17a   :  { %2242 = vmatpush1.bf16.msra.mxu0 %v3669_v4  ;;  %3180 = vmatprep.subr.bf16.mxu1 %v3712_v7 }
 0x17b   :  { %2243 = vmatprep.subr.bf16.mxu0 %v3674_v5 }
 0x17e   :  { %2244 = vmatpush1.bf16.msra.mxu0 %v3672_v8  ;;  %v3730_v8 = vld [vmem:[#allocation8 + $0x148] sm:$0xff]  }
 0x17f   :  { %2245 = vmatprep.subr.bf16.mxu0 %v3677_v9  ;;  %v3731_v9 = vld [vmem:[#allocation8 + $0x108] sm:$0xff]  }
 0x182   :  { %2246 = vmatpush1.bf16.msra.mxu0 %v3675_v10  ;;  %v3732_v10 = vld [vmem:[#allocation8 + $0x150] sm:$0xff]  }
 0x183   :  { %2247 = vmatprep.subr.bf16.mxu0 %v3680_v11  ;;  %v3733_v11 = vld [vmem:[#allocation8 + $0x110] sm:$0xff]  }
 0x186   :  { %2248 = vmatpush1.bf16.msra.mxu0 %v3678_v12  ;;  %v3734_v12 = vld [vmem:[#allocation8 + $0x158] sm:$0xff]  }
 0x187   :  { %2249 = vmatprep.subr.bf16.mxu0 %v3683_v14  ;;  %v3735_v14 = vld [vmem:[#allocation8 + $0x118] sm:$0xff]  }
 0x18a   :  { %2250 = vmatpush1.bf16.msra.mxu0 %v3681_v15  ;;  %v3736_v15 = vld [vmem:[#allocation8 + $0x160] sm:$0xff]  }
 0x18b   :  { %2251 = vmatprep.subr.bf16.mxu0 %v3686_v16  ;;  %v3737_v16 = vld [vmem:[#allocation8 + $0x120] sm:$0xff]  }
 0x18e   :  { %2252 = vmatpush1.bf16.msra.mxu0 %v3684_v17  ;;  %v3738_v17 = vld [vmem:[#allocation8 + $0x168] sm:$0xff]  }
 0x18f   :  { %2253 = vmatprep.subr.bf16.mxu0 %v3689_v18  ;;  %v3739_v18 = vld [vmem:[#allocation8 + $0x128] sm:$0xff]  }
 0x192   :  { %2254 = vmatpush1.bf16.msra.mxu0 %v3687_v20  ;;  %v3740_v20 = vld [vmem:[#allocation8 + $0x170] sm:$0xff]  }
 0x193   :  { %2255 = vmatprep.subr.bf16.mxu0 %v3692_v21  ;;  %v3741_v21 = vld [vmem:[#allocation8 + $0x130] sm:$0xff]  }
 0x196   :  { %2256 = vmatpush1.bf16.msra.mxu0 %v3690_v22  ;;  %v3742_v22 = vld [vmem:[#allocation8 + $0x178] sm:$0xff]  }
 0x197   :  { %2257 = vmatprep.subr.bf16.mxu0 %v3695_v24  ;;  %v3743_v24 = vld [vmem:[#allocation8 + $0x138] sm:$0xff]  }
 0x19a   :  { %2258 = vmatpush1.bf16.msra.mxu0 %v3693_v25  ;;  %v393_v25 = vsub.s32 4, %v4001_v42 }
 0x19c   :  { %v394_v28 = vrot.slane %v4047_v27, %v393_v25  ;;  %v3109_v27 = vld [vmem:[#allocation10] ss:$0 sm:$0xff] }
 0x19d   :  { %2260 = vmatmul.mubr.bf16.vlgmr.msra.gmra.mrb[4].mxu0 %v4012_v63 }
 0x1b0   :  { %v2015_v33 = vpop.f32.mrb[0].mxu0 }
 0x1b1   :  { %v3225_v34 = vadd.f32 %v2015_v33, %v1934_v31  ;;  %v2017_v35 = vpop.f32.mrb[1].mxu0 }
 0x1b2   :  { %v3227_v36 = vadd.f32 %v2017_v35, %v1936_v32  ;;  %v2019_v37 = vpop.f32.mrb[2].mxu0 }
 0x1b3   :  { %3744 = vtanh.f32 %v3225_v34  ;;  %v2020_v38 = vpop.f32.mrb[3].mxu0 }
 0x1b4   :  { %3746 = vtanh.f32 %v3227_v36 }
 0x1bd   :  { %v3745_v63 = vpop.eup %3744 }
 0x1be   :  { %v3747_v39 = vpop.eup %3746  ;;  %v2274_v43 = vpack.c.bf16 %v3745_v63, %v3745_v63 }
 0x1bf   :  { %v2275_v40 = vpack.c.bf16 %v3747_v39, %v3747_v39 }
 0x1c1   :  { %2703 = vmatprep.mubr.bf16.mxu1 %v2275_v40 }
 0x1c2   :  { %2704 = vmatmul.mubr.bf16.vlgmr.msra.gmra.mrb[8].mxu1 %v2274_v43 }
 0x1c3   :  { %3181 = vmatpush3.bf16.msra.mxu1 %v3713_v41 }
 0x1c4   :  { %3182 = vmatprep.subr.bf16.mxu1 %v3714_v44 }
 0x1c7   :  { %3183 = vmatpush3.bf16.msra.mxu1 %v3715_v62 }
 0x1c8   :  { %3184 = vmatprep.subr.bf16.mxu1 %v3716_v13 }
 0x1cb   :  { %3185 = vmatpush3.bf16.msra.mxu1 %v3717_v45 }
 0x1cc   :  { %3186 = vmatprep.subr.bf16.mxu1 %v3718_v46 }
 0x1cf   :  { %3187 = vmatpush3.bf16.msra.mxu1 %v3719_v47 }
 0x1d0   :  { %3188 = vmatprep.subr.bf16.mxu1 %v3720_v19 }
 0x1d3   :  { %3189 = vmatpush3.bf16.msra.mxu1 %v3721_v48 }
 0x1d4   :  { %3190 = vmatprep.subr.bf16.mxu1 %v3722_v23 }
 0x1d7   :  { %3191 = vmatpush3.bf16.msra.mxu1 %v3723_v49 }
 0x1d8   :  { %3192 = vmatprep.subr.bf16.mxu1 %v3724_v50 }
 0x1db   :  { %3193 = vmatpush3.bf16.msra.mxu1 %v3725_v51 }
 0x1dc   :  { %3194 = vmatprep.subr.bf16.mxu1 %v3726_v3 }
 0x1df   :  { %3195 = vmatpush3.bf16.msra.mxu1 %v3727_v52 }
 0x1e0   :  { %3202 = vmatprep.subr.bf16.mxu1 %v3728_v53 }
 0x22f   :  { %v2138_v58 = vpop.f32.mrb[4].mxu1 }
 0x230   :  { %v3228_v59 = vadd.f32 %v2138_v58, %v386_v56  ;;  %v2140_v60 = vpop.f32.mrb[5].mxu1 }
 0x231   :  { %v3229_v61 = vadd.f32 %v2140_v60, %v390_v57  ;;  %v2142_v0 = vpop.f32.mrb[6].mxu1 }
 0x232   :  { %3748 = vtanh.f32 %v3228_v59  ;;  %v2143_v1 = vpop.f32.mrb[7].mxu1 }
 0x233   :  { %3750 = vtanh.f32 %v3229_v61 }
 0x23c   :  { %v3749_v2 = vpop.eup %3748 }
 0x23d   :  { %v3751_v4 = vpop.eup %3750  ;;  %v2276_v7 = vpack.c.bf16 %v3749_v2, %v3749_v2 }
 0x23e   :  { %v2277_v5 = vpack.c.bf16 %v3751_v4, %v3751_v4 }
 0x240   :  { %2743 = vmatprep.mubr.bf16.mxu1 %v2277_v5 }
 0x241   :  { %2744 = vmatmul.mubr.bf16.vlgmr.msra.gmra.mrb[12].mxu1 %v2276_v7 }
 0x242   :  { %3203 = vmatpush3.bf16.msra.mxu1 %v3729_v6 }
 0x243   :  { %3204 = vmatprep.subr.bf16.mxu1 %v3730_v8 }
 0x246   :  { %3205 = vmatpush3.bf16.msra.mxu1 %v3731_v9 }
 0x247   :  { %3206 = vmatprep.subr.bf16.mxu1 %v3732_v10 }
 0x24a   :  { %3207 = vmatpush3.bf16.msra.mxu1 %v3733_v11 }
 0x24b   :  { %3208 = vmatprep.subr.bf16.mxu1 %v3734_v12 }
 0x24e   :  { %3209 = vmatpush3.bf16.msra.mxu1 %v3735_v14 }
 0x24f   :  { %3210 = vmatprep.subr.bf16.mxu1 %v3736_v15 }
 0x252   :  { %3211 = vmatpush3.bf16.msra.mxu1 %v3737_v16 }
 0x253   :  { %3212 = vmatprep.subr.bf16.mxu1 %v3738_v17 }
 0x256   :  { %3213 = vmatpush3.bf16.msra.mxu1 %v3739_v18 }
 0x257   :  { %3214 = vmatprep.subr.bf16.mxu1 %v3740_v20 }
 0x25a   :  { %3215 = vmatpush3.bf16.msra.mxu1 %v3741_v21 }
 0x25b   :  { %3216 = vmatprep.subr.bf16.mxu1 %v3742_v22 }
 0x25e   :  { %3217 = vmatpush3.bf16.msra.mxu1 %v3743_v24 }
 0x270   :  { %v2261_v30 = vpop.f32.mrb[4].mxu0 }
 0x271   :  { %v3230_v31 = vadd.f32 %v2261_v30, %v394_v28  ;;  %v2263_v32 = vpop.f32.mrb[5].mxu0 }
 0x272   :  { %v3231_v33 = vadd.f32 %v2263_v32, %v398_v29  ;;  %v2265_v34 = vpop.f32.mrb[6].mxu0 }
 0x273   :  { %3752 = vtanh.f32 %v3230_v31  ;;  %v2266_v35 = vpop.f32.mrb[7].mxu0 }
 0x274   :  { %3754 = vtanh.f32 %v3231_v33 }
 0x27d   :  { %v3753_v36 = vpop.eup %3752 }
 0x27e   :  { %v3755_v37 = vpop.eup %3754  ;;  %v2278_v63 = vpack.c.bf16 %v3753_v36, %v3753_v36 }
 0x27f   :  { %v2279_v38 = vpack.c.bf16 %v3755_v37, %v3755_v37 }
 0x281   :  { %2783 = vmatprep.mubr.bf16.mxu1 %v2279_v38 }
 0x282   :  { %2784 = vmatmul.mubr.bf16.vlgmr.msra.gmra.mrb[16].mxu1 %v2278_v63 }
 0x295   :  { %v3174_v39 = vpop.f32.mrb[8].mxu1 }
 0x296   :  { %v3175_v42 = vpop.f32.mrb[9].mxu1 }
 0x297   :  { %v3176_v40 = vadd.f32 %v3175_v42, %v3174_v39  ;;  %v3177_v41 = vpop.f32.mrb[10].mxu1 }
 0x298   :  { %v3178_v43 = vpop.f32.mrb[11].mxu1 }
 0x299   :  { %v2706_v13 = vadd.f32 %v3176_v40, %v3109_v27 }
 0x314   :  { %v3196_v44 = vpop.f32.mrb[12].mxu1 }
 0x315   :  { %v3197_v62 = vpop.f32.mrb[13].mxu1 }
 0x316   :  { %v3198_v45 = vadd.f32 %v3197_v62, %v3196_v44  ;;  %v3199_v46 = vpop.f32.mrb[14].mxu1 }
 0x317   :  { %v3200_v47 = vpop.f32.mrb[15].mxu1 }
 0x318   :  { %v2746_v19 = vadd.f32 %v3198_v45, %v2706_v13 }
 0x355   :  { %v3218_v48 = vpop.f32.mrb[16].mxu1 }
 0x356   :  { %v3219_v23 = vpop.f32.mrb[17].mxu1 }
 0x357   :  { %v3220_v49 = vadd.f32 %v3219_v23, %v3218_v48  ;;  %v3221_v50 = vpop.f32.mrb[18].mxu1 }
 0x358   :  { %v3222_v51 = vpop.f32.mrb[19].mxu1 }
 0x359   :  { %v2786_v3 = vadd.f32 %v3220_v49, %v2746_v19 }
 0x35b   :  { %v2792_v52 = vsel %vm2791_vm0, %v2786_v3, -inf }
 0x35c   :  { %2793 = vmax.xlane.f32.xlu0 %v2792_v52 }
 0x3e9   :  { %v2794_v53 = vpop.xlane.xlu0 %2793 }
 0x3ea   :  { %v2795_v54 = vsub.f32 %v2786_v3, %v2794_v53 }
 0x3ec   :  { %v2796_v55 = vmul.f32 1.442695, %v2795_v54 }
 0x3ee   :  { %3756 = vpow2.f32 %v2796_v55 }
 0x3f8   :  { %v3757_v56 = vpop.eup %3756 }
 0x3f9   :  { %v2798_v57 = vsel %vm2791_vm0, %v3757_v56, 0.0 }
 0x3fa   :  { %2799 = vadd.xlane.f32.xlu0 %v2798_v57 }
 0x487   :  { %v2800_v58 = vpop.xlane.xlu0 %2799 }
 0x488   :  { %3758 = vrcp.f32 %v2800_v58 }
 0x492   :  { %v3759_v59 = vpop.eup %3758 }
 0x493   :  { %v2802_v60 = vmul.f32 %v3759_v59, %v3757_v56 }
 0x495   :  { %2803 = vst [vmem:[#allocation11] sm:$0x3] %v2802_v60 }
 0x496   :  { %3881 = shalt.err (!%p3878_p2)
}
 0x497   :  { %s3882_s6 = scalar_lea.hbm %s4077_s5, 32 }
 0x498   :  { %p3883_p3 = scmp.ne.s32.totalorder %s4077_s5, %s3882_s6  ;;  %p3886_p4 = scmp.lt.u32.totalorder %s3882_s6, %s4077_s5 }
 0x49a   :  { %p3888_p5 = pnand %p3886_p4, %p3883_p3 }
 0x49c   :  { %3891 = shalt.err (!%p3888_p5)
}
 0x49d   :  { %2813 = dma.vmem_to_hbm [thread:$0]  %s2811_s28, 32, %s4077_s5, [#allocation4]  }
 0x49e   :  { %3898 = dma.done.wait [#allocation4], 32  }
 0x49f   :  { %3899 = vsyncadd [#allocation4], 4294967264 }
 0x4a0   :  { %2817 = vsyncpa [#allocation3], 1 }
 0x4a1   :  { %2818 = vsyncpa [#allocation6], 1 }
 0x4a2   :  { %2819 = vsyncpa [#allocation9], 1 }
 0x4a3   :  { %2820 = vsyncpa [#allocation4], 1 }

</bundles_post_ra>
